<compile_context>
chip_gen: v7x
topology: tpu7x:2x2x1
jax: 0.10.0
libtpu: 0.0.40
codegen_flags: <defaults>
</compile_context>

<pallas_src>
import functools

import numpy as np

import jax
import jax.numpy as jnp
from jax import lax
from jax.experimental import pallas as pl
from jax.experimental.pallas import tpu as pltpu


def _round_up(x: int, m: int) -> int:
    return ((x + m - 1) // m) * m


def _vmem_capacity_bytes() -> int:
    """Physical VMEM of the current TPU generation, with a safe fallback."""
    try:
        info = pltpu.get_tpu_info()
        cap = getattr(info, "vmem_capacity_bytes", None)
        if cap:
            return int(cap)
    except Exception:
        pass
    return 64 * 1024 * 1024  # conservative (v7x-sized) fallback


# ----------------------------------------------------------------------------
# Pallas kernel: cross distances from a stacked point cloud X = [A_pad; B]
#   input  : X (R, D_pad) with R = na_pad + nb    -- grid tiles the D axis
#   outputs: daa  (na_pad, na_pad)  distances within A (diag forced to 0)
#            dmin (1, na_pad)       min_j ||a_i - b_j||  (lane-dense row)
# ----------------------------------------------------------------------------
def _cross_dist_kernel(x_ref, daa_ref, dmin_ref, g_sc, nrm_sc, *, na_pad):
    k = pl.program_id(0)

    @pl.when(k == 0)
    def _init():
        g_sc[...] = jnp.zeros_like(g_sc)
        nrm_sc[...] = jnp.zeros_like(nrm_sc)

    x = x_ref[...]                      # (R, TK), compute dtype (bf16 or f32)
    a = x[:na_pad, :]                   # (na_pad, TK) -- static, 128-row aligned

    # Single fused Gram update: [A_pad; B] @ A_pad^T, f32 MXU accumulation.
    dn_gram = (((1,), (1,)), ((), ()))
    g_sc[...] += lax.dot_general(x, a, dn_gram,
                                 preferred_element_type=jnp.float32)   # (R, na_pad)

    # Row squared norms via the MXU (dot with a ones column), f32 accumulation.
    # Avoids an f32 upcast of the streamed tile and a VPU/XLU lane reduction.
    ones_col = jnp.ones((x.shape[1], 1), dtype=x.dtype)
    dn_norm = (((1,), (0,)), ((), ()))
    nrm_sc[...] += lax.dot_general(x * x, ones_col, dn_norm,
                                   preferred_element_type=jnp.float32)  # (R, 1)

    @pl.when(k == pl.num_programs(0) - 1)
    def _finalize():
        g = g_sc[...]                    # (R, na_pad)
        gaa = g[:na_pad, :]              # (na_pad, na_pad)
        gba = g[na_pad:, :]              # (nb, na_pad)
        nb_col = nrm_sc[...][na_pad:, :]  # (nb, 1)  ||b_j||^2

        # ||a_i||^2 from the Gram diagonal, extracted in both layouts with
        # masked reductions (no transpose, no ones-matmul on (na,na)).
        rows = lax.broadcasted_iota(jnp.int32, (na_pad, na_pad), 0)
        cols = lax.broadcasted_iota(jnp.int32, (na_pad, na_pad), 1)
        eye = rows == cols
        diag = jnp.where(eye, gaa, 0.0)
        na_col = jnp.sum(diag, axis=1, keepdims=True)    # (na_pad, 1)
        na_row = jnp.sum(diag, axis=0, keepdims=True)    # (1, na_pad)

        d2_aa = na_col + na_row - 2.0 * gaa
        d2_aa = jnp.where(eye, 0.0, jnp.maximum(d2_aa, 0.0))
        daa_ref[...] = jnp.sqrt(d2_aa)

        d2_ba = nb_col + na_row - 2.0 * gba              # (nb, na_pad)
        d2_min = jnp.min(jnp.maximum(d2_ba, 0.0), axis=0, keepdims=True)
        dmin_ref[...] = jnp.sqrt(d2_min)                 # (1, na_pad), lane-dense


def cross_distances(points_a, points_b, compute_dtype=None):
    """Returns (daa (Na, Na), dmin (Na,)) in float32."""
    na, d = points_a.shape
    nb, d2 = points_b.shape
    assert d == d2, "point clouds must share the feature dimension"

    if compute_dtype is None:
        dtype = np.dtype(jnp.promote_types(points_a.dtype, points_b.dtype))
    else:
        dtype = np.dtype(compute_dtype)
    itemsize = dtype.itemsize

    na_pad = _round_up(na, 128)          # lane-dense outputs / Gram columns
    r_rows = na_pad + nb                 # stacked [A_pad; B] row count

    # --- generation-aware VMEM / tile budget --------------------------------
    cap = _vmem_capacity_bytes()
    sizing_budget = int(cap * 0.75)      # size tiles against ~75% of VMEM
    vmem_limit = int(cap * 0.85)         # request ~85% (compiler-scratch headroom)

    persistent = (r_rows * na_pad * 4                      # Gram accumulator
                  + _round_up(r_rows, 8) * 128 * 4)        # norm accumulator (lane-padded)
    outputs = 2 * (na_pad * na_pad + 8 * na_pad) * 4       # daa + dmin (conservative 2x)
    avail = max(sizing_budget - persistent - outputs, 2 * 1024 * 1024)
    per_col = 2 * r_rows * itemsize                        # double-buffered X column
    max_tk = max(128, (avail // per_col) // 128 * 128)

    # Keep >= ~4 pipeline steps so DMA overlaps compute, unless D is tiny.
    if d < 512:
        tk = d
        d_pad = d
    else:
        tk = min(max_tk, _round_up(pl.cdiv(d, 4), 128))
        d_pad = pl.cdiv(d, tk) * tk

    # --- stacked [A_pad; B] input (fuses with the dtype cast / zero padding) --
    a = jnp.pad(points_a.astype(dtype), ((0, na_pad - na), (0, d_pad - d)))
    b = jnp.pad(points_b.astype(dtype), ((0, 0), (0, d_pad - d)))
    x = jnp.concatenate([a, b], axis=0)                    # (R, D_pad)

    grid = (d_pad // tk,)
    flops = 2 * r_rows * na_pad * d_pad + 2 * r_rows * d_pad
    bytes_accessed = r_rows * d_pad * itemsize + (na_pad * na_pad + na_pad) * 4

    kernel = functools.partial(_cross_dist_kernel, na_pad=na_pad)

    # TODO(synk): for v7x / large batches, add a leading 'parallel' grid axis over
    # Nb row-tiles (per-tile partial dmin combined with jnp.minimum in the wrapper)
    # to engage the second TensorCore and shrink the persistent Gram scratch.
    # TODO(synk): sweep pipeline_mode=pl.Buffered(3) on the X input if profiles
    # still show exposed DMA after the tile-size fix.
    daa, dmin_row = pl.pallas_call(
        kernel,
        out_shape=(
            jax.ShapeDtypeStruct((na_pad, na_pad), jnp.float32),
            jax.ShapeDtypeStruct((1, na_pad), jnp.float32),
        ),
        grid_spec=pltpu.PrefetchScalarGridSpec(
            num_scalar_prefetch=0,
            grid=grid,
            in_specs=[pl.BlockSpec((r_rows, tk), lambda k: (0, k))],
            out_specs=[
                pl.BlockSpec((na_pad, na_pad), lambda k: (0, 0)),
                pl.BlockSpec((1, na_pad), lambda k: (0, 0)),
            ],
            scratch_shapes=[
                pltpu.VMEM((r_rows, na_pad), jnp.float32),   # fused Gram accumulator
                pltpu.VMEM((r_rows, 1), jnp.float32),        # row squared norms
            ],
        ),
        compiler_params=pltpu.CompilerParams(
            dimension_semantics=("arbitrary",),
            vmem_limit_bytes=vmem_limit,
        ),
        cost_estimate=pl.CostEstimate(
            flops=flops, transcendentals=0, bytes_accessed=bytes_accessed),
    )(x)
    return daa[:na, :na], dmin_row[0, :na]


# ----------------------------------------------------------------------------
# H0 cross-barcode total length == MST weight of the collapsed graph (Prim).
# ----------------------------------------------------------------------------
def _mst_total_weight(w):
    n = w.shape[0]
    inf = jnp.float32(jnp.inf)
    start = n - 1  # start from the collapsed-Q vertex
    key0 = jnp.full((n,), inf, jnp.float32).at[start].set(0.0)
    visited0 = jnp.zeros((n,), jnp.bool_)

    def body(_, carry):
        key, visited, total = carry
        masked = jnp.where(visited, inf, key)
        u = jnp.argmin(masked)
        total = total + masked[u]                     # first pick contributes 0
        visited = visited.at[u].set(True)
        key = jnp.where(visited, key, jnp.minimum(key, w[u]))
        return key, visited, total

    _, _, total = jax.lax.fori_loop(0, n, body, (key0, visited0, jnp.float32(0.0)))
    return total


@functools.partial(jax.jit, static_argnames=("compute_dtype",))
def _mtopdiv_dim0(points_a, points_b, compute_dtype=None):
    daa, dmin = cross_distances(points_a, points_b, compute_dtype=compute_dtype)
    # TODO(synk): the (n, n) w-assembly below could be fused into the kernel's
    # finalize (write w directly, padded) to skip this tiny HBM round-trip.
    top = jnp.concatenate([daa, dmin[:, None]], axis=1)
    bot = jnp.concatenate([dmin, jnp.zeros((1,), jnp.float32)])[None, :]
    w = jnp.concatenate([top, bot], axis=0)
    return _mst_total_weight(w)


def mtopdiv(points_a, points_b, dim=0, *, compute_dtype=jnp.bfloat16):
    if dim != 0:
        # TODO(synk): dim>0 cross-barcodes need persistent-homology boundary-matrix
        # reduction, which has no clean Pallas equivalent; only dim=0 is implemented.
        raise NotImplementedError("Only dimension 0 MTopDiv is implemented.")
    return _mtopdiv_dim0(points_a, points_b, compute_dtype=compute_dtype)


def get_random_sample(batch, n, key):
    idx = jax.random.permutation(key, batch.shape[0])[:n]
    return batch[idx]


class MTopDivYXLoss:
    GENERATOR = "generator"
    DISCRIMINATOR = "discriminator"

    def __init__(self, dimension: int = 0, weight: float = 1.0,
                 denoising_fraction: int = 4, compute_dtype=jnp.bfloat16):
        # 'weight' buffer kept for parity with the torch module (unused in fwd).
        self.weight = jnp.asarray(weight, jnp.float32)
        self.dim = dimension
        self.denoising_fraction = denoising_fraction
        # bf16 inputs (f32 accumulation) halve the dominant HBM stream; pass
        # compute_dtype=None to keep the native dtype if tolerance demands it.
        self.compute_dtype = compute_dtype

    def _forward_impl(self, batch, output, key):
        n = batch.shape[0] // self.denoising_fraction
        pa = get_random_sample(batch, n, key).reshape(n, -1)
        pb = output.reshape(output.shape[0], -1)
        return mtopdiv(pa, pb, self.dim, compute_dtype=self.compute_dtype)

    def __call__(self, batch, output, optimization_mode, *, key):
        if optimization_mode == self.GENERATOR:
            return self._forward_impl(batch, output, key)
        elif optimization_mode == self.DISCRIMINATOR:
            return None


# ----------------------------------------------------------------------------
# Pure-JAX reference (for sanity checking the Pallas distance path).
# ----------------------------------------------------------------------------
def _mtopdiv_ref(points_a, points_b):
    diff_aa = points_a[:, None, :] - points_a[None, :, :]
    daa = jnp.sqrt(jnp.sum(diff_aa * diff_aa, axis=-1))
    diff_ab = points_a[:, None, :] - points_b[None, :, :]
    dmin = jnp.min(jnp.sqrt(jnp.sum(diff_ab * diff_ab, axis=-1)), axis=1)
    na = points_a.shape[0]
    n = na + 1
    w = jnp.zeros((n, n), jnp.float32)
    w = w.at[:na, :na].set(daa).at[:na, na].set(dmin).at[na, :na].set(dmin)
    return _mst_total_weight(w)


if __name__ == "__main__":
    key = jax.random.PRNGKey(0)
    k_batch, k_out, k_sample = jax.random.split(key, 3)

    B, C, H, W = 16, 4, 16, 16                      # NCHW, like the torch module
    batch = jax.random.normal(k_batch, (B, C, H, W), jnp.float32)
    output = jax.random.normal(k_out, (B, C, H, W), jnp.float32)

    loss_mod = MTopDivYXLoss(dimension=0, weight=1.0, denoising_fraction=4)

    # Generator mode -> real loss value (Pallas kernel on the hot path, bf16 inputs).
    loss = loss_mod(batch, output, MTopDivYXLoss.GENERATOR, key=k_sample)
    loss = jax.block_until_ready(loss)

    # Discriminator mode -> None, as in the torch module.
    assert loss_mod(batch, output, MTopDivYXLoss.DISCRIMINATOR, key=k_sample) is None

    # Sanity check against a pure-JAX f32 reference of the same math.
    n = B // loss_mod.denoising_fraction
    pa = get_random_sample(batch, n, k_sample).reshape(n, -1)
    pb = output.reshape(B, -1)
    ref = jax.block_until_ready(_mtopdiv_ref(pa, pb))

    # bf16-input path: tolerance widened for the input cast (f32 accumulation kept).
    assert jnp.allclose(loss, ref, rtol=1e-2, atol=1e-1), (loss, ref)

    # f32-input path: tight tolerance.
    loss_f32 = jax.block_until_ready(mtopdiv(pa, pb, 0, compute_dtype=None))
    assert jnp.allclose(loss_f32, ref, rtol=1e-3, atol=1e-2), (loss_f32, ref)

    print("KERNEL_OK")
</pallas_src>

<mosaic_0001>
module attributes {stable_mosaic.version = 11 : i64} {
  func.func @_cross_dist_kernel(%arg0: i32, %arg1: memref<144x256xbf16, #tpu.memory_space<vmem>>, %arg2: memref<128x128xf32, #tpu.memory_space<vmem>>, %arg3: memref<1x128xf32, #tpu.memory_space<vmem>>, %arg4: memref<144x128xf32, #tpu.memory_space<vmem>>, %arg5: memref<144x1xf32, #tpu.memory_space<vmem>>) attributes {dimension_semantics = [#tpu.dimension_semantics<arbitrary>], iteration_bounds = array<i64: 4>, scalar_prefetch = 0 : i64, scratch_operands = 2 : i64, tpu.core_type = #tpu.core_type<tc>, window_params = [{transform_indices = @transform_0, window_bounds = array<i64: 144, 256>}, {pipeline_mode = #tpu.pipeline_mode<synchronous>, transform_indices = @transform_1, window_bounds = array<i64: 128, 128>}, {pipeline_mode = #tpu.pipeline_mode<synchronous>, transform_indices = @transform_2, window_bounds = array<i64: 1, 128>}]} {
    %c0_i32 = arith.constant 0 : i32
    %0 = arith.cmpi eq, %arg0, %c0_i32 : i32
    %1 = arith.extui %0 : i1 to i32
    %c0_i32_0 = arith.constant 0 : i32
    %2 = arith.cmpi ne, %1, %c0_i32_0 : i32
    scf.if %2 {
      %cst_13 = arith.constant 0.000000e+00 : f32
      %18 = vector.broadcast %cst_13 : f32 to vector<144x128xf32>
      %c0_14 = arith.constant 0 : index
      %c0_15 = arith.constant 0 : index
      %19 = vector.load %arg4[%c0_14, %c0_15] : memref<144x128xf32, #tpu.memory_space<vmem>>, vector<144x128xf32>
      tpu.vector_store %arg4[%c0_14, %c0_15], %18 {strides = array<i32>} : memref<144x128xf32, #tpu.memory_space<vmem>>, vector<144x128xf32>,
      %cst_16 = arith.constant 0.000000e+00 : f32
      %20 = vector.broadcast %cst_16 : f32 to vector<144x1xf32>
      %c0_17 = arith.constant 0 : index
      %c0_18 = arith.constant 0 : index
      %21 = vector.load %arg5[%c0_17, %c0_18] : memref<144x1xf32, #tpu.memory_space<vmem>>, vector<144x1xf32>
      tpu.vector_store %arg5[%c0_17, %c0_18], %20 {strides = array<i32>} : memref<144x1xf32, #tpu.memory_space<vmem>>, vector<144x1xf32>,
    } else {
    }
    %c0 = arith.constant 0 : index
    %c0_1 = arith.constant 0 : index
    %3 = vector.load %arg1[%c0, %c0_1] : memref<144x256xbf16, #tpu.memory_space<vmem>>, vector<144x256xbf16>
    %4 = vector.extract_strided_slice %3 {offsets = [0, 0], sizes = [128, 256], strides = [1, 1]} : vector<144x256xbf16> to vector<128x256xbf16>
    %c0_2 = arith.constant 0 : index
    %c0_3 = arith.constant 0 : index
    %5 = vector.load %arg4[%c0_2, %c0_3] : memref<144x128xf32, #tpu.memory_space<vmem>>, vector<144x128xf32>
    %cst = arith.constant dense<0.000000e+00> : vector<144x128xf32>
    %6 = tpu.matmul %3, %4, %cst {dimension_numbers = #tpu.dot_dimension_numbers<[1], [1], [0], [0], [0, 0, 1, 0], [], []>} : vector<144x256xbf16>, vector<128x256xbf16>, vector<144x128xf32> -> vector<144x128xf32>
    %7 = arith.addf %5, %6 : vector<144x128xf32>
    %c0_4 = arith.constant 0 : index
    %c0_5 = arith.constant 0 : index
    %8 = vector.load %arg4[%c0_4, %c0_5] : memref<144x128xf32, #tpu.memory_space<vmem>>, vector<144x128xf32>
    tpu.vector_store %arg4[%c0_4, %c0_5], %7 {strides = array<i32>} : memref<144x128xf32, #tpu.memory_space<vmem>>, vector<144x128xf32>,
    %cst_6 = arith.constant 1.000000e+00 : bf16
    %9 = vector.broadcast %cst_6 : bf16 to vector<256x1xbf16>
    %c0_7 = arith.constant 0 : index
    %c0_8 = arith.constant 0 : index
    %10 = vector.load %arg5[%c0_7, %c0_8] : memref<144x1xf32, #tpu.memory_space<vmem>>, vector<144x1xf32>
    %11 = arith.mulf %3, %3 : vector<144x256xbf16>
    %cst_9 = arith.constant dense<0.000000e+00> : vector<144x1xf32>
    %12 = tpu.matmul %11, %9, %cst_9 {dimension_numbers = #tpu.dot_dimension_numbers<[1], [0], [0], [1], [0, 0, 1, 1], [], []>} : vector<144x256xbf16>, vector<256x1xbf16>, vector<144x1xf32> -> vector<144x1xf32>
    %13 = arith.addf %10, %12 : vector<144x1xf32>
    %c0_10 = arith.constant 0 : index
    %c0_11 = arith.constant 0 : index
    %14 = vector.load %arg5[%c0_10, %c0_11] : memref<144x1xf32, #tpu.memory_space<vmem>>, vector<144x1xf32>
    tpu.vector_store %arg5[%c0_10, %c0_11], %13 {strides = array<i32>} : memref<144x1xf32, #tpu.memory_space<vmem>>, vector<144x1xf32>,
    %c3_i32 = arith.constant 3 : i32
    %15 = arith.cmpi eq, %arg0, %c3_i32 : i32
    %16 = arith.extui %15 : i1 to i32
    %c0_i32_12 = arith.constant 0 : i32
    %17 = arith.cmpi ne, %16, %c0_i32_12 : i32
    scf.if %17 {
      %c0_13 = arith.constant 0 : index
      %c0_14 = arith.constant 0 : index
      %18 = vector.load %arg4[%c0_13, %c0_14] : memref<144x128xf32, #tpu.memory_space<vmem>>, vector<144x128xf32>
      %19 = vector.extract_strided_slice %18 {offsets = [0, 0], sizes = [128, 128], strides = [1, 1]} : vector<144x128xf32> to vector<128x128xf32>
      %20 = vector.extract_strided_slice %18 {offsets = [128, 0], sizes = [16, 128], strides = [1, 1]} : vector<144x128xf32> to vector<16x128xf32>
      %c0_15 = arith.constant 0 : index
      %c0_16 = arith.constant 0 : index
      %21 = vector.load %arg5[%c0_15, %c0_16] : memref<144x1xf32, #tpu.memory_space<vmem>>, vector<144x1xf32>
      %22 = vector.extract_strided_slice %21 {offsets = [128, 0], sizes = [16, 1], strides = [1, 1]} : vector<144x1xf32> to vector<16x1xf32>
      %23 = tpu.iota {dimensions = array<i32: 0>} : vector<128x128xi32>
      %24 = tpu.iota {dimensions = array<i32: 1>} : vector<128x128xi32>
      %25 = arith.cmpi eq, %23, %24 : vector<128x128xi32>
      %cst_17 = arith.constant 0.000000e+00 : f32
      %26 = vector.broadcast %cst_17 : f32 to vector<128x128xf32>
      %27 = arith.select %25, %19, %26 : vector<128x128xi1>, vector<128x128xf32>
      %cst_18 = arith.constant dense<0.000000e+00> : vector<128xf32>
      %28 = vector.multi_reduction <add>, %27, %cst_18 [1] : vector<128x128xf32> to vector<128xf32>
      %29 = vector.shape_cast %28 : vector<128xf32> to vector<128x1xf32>
      %cst_19 = arith.constant dense<0.000000e+00> : vector<128xf32>
      %30 = vector.multi_reduction <add>, %27, %cst_19 [0] : vector<128x128xf32> to vector<128xf32>
      %31 = vector.shape_cast %30 : vector<128xf32> to vector<1x128xf32>
      %32 = vector.broadcast %29 : vector<128x1xf32> to vector<128x128xf32>
      %33 = vector.broadcast %31 : vector<1x128xf32> to vector<128x128xf32>
      %34 = arith.addf %32, %33 : vector<128x128xf32>
      %cst_20 = arith.constant 2.000000e+00 : f32
      %35 = vector.broadcast %cst_20 : f32 to vector<128x128xf32>
      %36 = arith.mulf %35, %19 : vector<128x128xf32>
      %37 = arith.subf %34, %36 : vector<128x128xf32>
      %cst_21 = arith.constant 0.000000e+00 : f32
      %38 = vector.broadcast %cst_21 : f32 to vector<128x128xf32>
      %39 = arith.maximumf %37, %38 : vector<128x128xf32>
      %cst_22 = arith.constant 0.000000e+00 : f32
      %40 = vector.broadcast %cst_22 : f32 to vector<128x128xf32>
      %41 = arith.select %25, %40, %39 : vector<128x128xi1>, vector<128x128xf32>
      %42 = math.sqrt %41 : vector<128x128xf32>
      %c0_23 = arith.constant 0 : index
      %c0_24 = arith.constant 0 : index
      %43 = vector.load %arg2[%c0_23, %c0_24] : memref<128x128xf32, #tpu.memory_space<vmem>>, vector<128x128xf32>
      tpu.vector_store %arg2[%c0_23, %c0_24], %42 {strides = array<i32>} : memref<128x128xf32, #tpu.memory_space<vmem>>, vector<128x128xf32>,
      %44 = vector.broadcast %22 : vector<16x1xf32> to vector<16x128xf32>
      %45 = vector.broadcast %31 : vector<1x128xf32> to vector<16x128xf32>
      %46 = arith.addf %44, %45 : vector<16x128xf32>
      %cst_25 = arith.constant 2.000000e+00 : f32
      %47 = vector.broadcast %cst_25 : f32 to vector<16x128xf32>
      %48 = arith.mulf %47, %20 : vector<16x128xf32>
      %49 = arith.subf %46, %48 : vector<16x128xf32>
      %cst_26 = arith.constant 0.000000e+00 : f32
      %50 = vector.broadcast %cst_26 : f32 to vector<16x128xf32>
      %51 = arith.maximumf %49, %50 : vector<16x128xf32>
      %cst_27 = arith.constant dense<0x7F800000> : vector<128xf32>
      %52 = vector.multi_reduction <minimumf>, %51, %cst_27 [0] : vector<16x128xf32> to vector<128xf32>
      %53 = vector.shape_cast %52 : vector<128xf32> to vector<1x128xf32>
      %54 = math.sqrt %53 : vector<1x128xf32>
      %c0_28 = arith.constant 0 : index
      %c0_29 = arith.constant 0 : index
      %55 = vector.load %arg3[%c0_28, %c0_29] : memref<1x128xf32, #tpu.memory_space<vmem>>, vector<1x128xf32>
      tpu.vector_store %arg3[%c0_28, %c0_29], %54 {strides = array<i32>} : memref<1x128xf32, #tpu.memory_space<vmem>>, vector<1x128xf32>,
    } else {
    }
    return
  }
  func.func @transform_0(%arg0: i32) -> (i32, i32) {
    %c0_i32 = arith.constant 0 : i32
    %c0_i32_0 = arith.constant 0 : i32
    return %c0_i32, %arg0 : i32, i32
  }
  func.func @transform_1(%arg0: i32) -> (i32, i32) {
    %c0_i32 = arith.constant 0 : i32
    %c0_i32_0 = arith.constant 0 : i32
    %c0_i32_1 = arith.constant 0 : i32
    return %c0_i32, %c0_i32_0 : i32, i32
  }
  func.func @transform_2(%arg0: i32) -> (i32, i32) {
    %c0_i32 = arith.constant 0 : i32
    %c0_i32_0 = arith.constant 0 : i32
    %c0_i32_1 = arith.constant 0 : i32
    return %c0_i32, %c0_i32_0 : i32, i32
  }
}

</mosaic_0001>

<bundles_post_ra>
// kernel: _mtopdiv_dim0.1
= control target key start
LH: loop header
LB: loop body
LE: loop exit
PB: predicated region body
PF: predicated region fallthrough
CT: control target
= control target key end

     0   :  { %s1459_s9 = smov 0   ;;  %s1461_s10 = smov 0   ;;  %s2018_s0 = inlined_call_operand.vmem [shape: bf16[144,1024], index: 0, kind: input, shape index: {}]   ;;  %s2019_s1 = inlined_call_operand.vmem [shape: f32[128,128], index: 1, kind: output, shape index: {0}]   ;;  %s2020_s2 = inlined_call_operand.vmem [shape: f32[1,128], index: 2, kind: output, shape index: {1}]  }
   0x1   :  { %s1463_s11 = smov 0  }
   0x2 LB: > { %s1218_s12 = sadd.s32 4294967295, %s1439_s11   ;;  %s1476_s13 = sadd.s32 1, %s1439_s11   ;;  %s1439_s11 = sphi %s1463_s11, %s2025_s11   ;;  %s1435_s10 = sphi %s1461_s10, %s2024_s10   ;;  %s1431_s9 = sphi %s1459_s9, %s2023_s9  }
   0x3   : > { %s17_s14 = ssub.s32 %s1439_s11, %s1476_s13  ;;  %s20_s15 = sadd.s32 1, %s1435_s10 }
   0x4   : > { %p18_p0 = scmp.eq.s32.totalorder %s17_s14, 0  ;;  %p27_p1 = scmp.ne.s32.totalorder %s1435_s10, %s1431_s9 }
   0x5   : > { %p28_p2 = scmp.eq.s32.totalorder %s1439_s11, 0  ;;  %p1220_p4 = scmp.ge.s32.totalorder %s1439_s11, 4 }
   0x6   : > { %s1485_s16 = scalar_select %p18_p0, %s1435_s10, %s20_s15  }
   0x7   : > { %p29_p3 = por %p28_p2, %p27_p1  ;;  %95 = sbr.rel (%p1220_p4) target bundleno = 36 (0x24), region = 16 }
   0xe   : > { %98 = sbr.rel (!%p29_p3) target bundleno = 36 (0x24), region = 20  ;;  %s100_s17 = sand.u32 (%p29_p3), 1, %s1435_s10  }
   0xf   : > { %s1264_s18 = sshll.u32 (%p29_p3), %s1439_s11, 3  ;;  %s1335_s19 = smul.u32 (%p29_p3), 144, %s100_s17 }
  0x10   : > { %s1493_s22 = scalar_lea.vmem (%p29_p3), %s2018_s0, %s1264_s18 }
  0x11   : > { %v167_v0 = vld [vmem:[%s1493_s22] sm:$0xff] (%p29_p3)  ;;  %s102_s23 = scalar_lea.vmem (%p29_p3), [#allocation4], %s1335_s19 }
  0x12   : > { %v169_v1 = vld [vmem:[%s1493_s22 + $0x20] sm:$0xff] (%p29_p3)  ;;  %168 = vst [vmem:[%s102_s23] sm:$0xff] (%p29_p3), %v167_v0 }
  0x13   : > { %v171_v2 = vld [vmem:[%s1493_s22 + $0x40] sm:$0xff] (%p29_p3)  ;;  %170 = vst [vmem:[%s102_s23 + $0x8] sm:$0xff] (%p29_p3), %v169_v1 }
  0x14   : > { %v173_v3 = vld [vmem:[%s1493_s22 + $0x60] sm:$0xff] (%p29_p3)  ;;  %172 = vst [vmem:[%s102_s23 + $0x10] sm:$0xff] (%p29_p3), %v171_v2 }
  0x15   : > { %v175_v4 = vld [vmem:[%s1493_s22 + $0x80] sm:$0xff]  ;;  %174 = vst [vmem:[%s102_s23 + $0x18] sm:$0xff] %v173_v3 }
  0x16   : > { %v177_v5 = vld [vmem:[%s1493_s22 + $0xa0] sm:$0xff]  ;;  %176 = vst [vmem:[%s102_s23 + $0x20] sm:$0xff] %v175_v4 }
  0x17   : > { %178 = vst [vmem:[%s102_s23 + $0x28] sm:$0xff] %v177_v5  ;;  %v179_v6 = vld [vmem:[%s1493_s22 + $0xc0] sm:$0xff] }
  0x18   : > { %v181_v7 = vld [vmem:[%s1493_s22 + $0xe0] sm:$0xff]  ;;  %180 = vst [vmem:[%s102_s23 + $0x30] sm:$0xff] %v179_v6 }
  0x19   : > { %v183_v8 = vld [vmem:[%s1493_s22 + $0x100] sm:$0xff]  ;;  %182 = vst [vmem:[%s102_s23 + $0x38] sm:$0xff] %v181_v7 }
  0x1a   : > { %184 = vst [vmem:[%s102_s23 + $0x40] sm:$0xff] %v183_v8  ;;  %v185_v9 = vld [vmem:[%s1493_s22 + $0x120] sm:$0xff] }
  0x1b   : > { %v187_v10 = vld [vmem:[%s1493_s22 + $0x140] sm:$0xff]  ;;  %186 = vst [vmem:[%s102_s23 + $0x48] sm:$0xff] %v185_v9 }
  0x1c   : > { %v189_v11 = vld [vmem:[%s1493_s22 + $0x160] sm:$0xff]  ;;  %188 = vst [vmem:[%s102_s23 + $0x50] sm:$0xff] %v187_v10 }
  0x1d   : > { %190 = vst [vmem:[%s102_s23 + $0x58] sm:$0xff] %v189_v11  ;;  %v191_v12 = vld [vmem:[%s1493_s22 + $0x180] sm:$0xff] }
  0x1e   : > { %v193_v13 = vld [vmem:[%s1493_s22 + $0x1a0] sm:$0xff]  ;;  %192 = vst [vmem:[%s102_s23 + $0x60] sm:$0xff] %v191_v12 }
  0x1f   : > { %v195_v14 = vld [vmem:[%s1493_s22 + $0x1c0] sm:$0xff]  ;;  %194 = vst [vmem:[%s102_s23 + $0x68] sm:$0xff] %v193_v13 }
  0x20   : > { %196 = vst [vmem:[%s102_s23 + $0x70] sm:$0xff] %v195_v14  ;;  %v197_v15 = vld [vmem:[%s1493_s22 + $0x1e0] sm:$0xff] }
  0x21   : > { %v199_v16 = vld [vmem:[%s1493_s22 + $0x200] sm:$0xff]  ;;  %198 = vst [vmem:[%s102_s23 + $0x78] sm:$0xff] %v197_v15 }
  0x22   : > { %v201_v17 = vld [vmem:[%s1493_s22 + $0x220] sm:$0xff]  ;;  %200 = vst [vmem:[%s102_s23 + $0x80] sm:$0xff] %v199_v16 }
  0x23   : > { %202 = vst [vmem:[%s102_s23 + $0x88] sm:$0xff] %v201_v17 }
  0x24 PF: > { %p1223_p5 = scmp.ge.s32.totalorder %s1439_s11, 1  ;;  %p207_p6 = scmp.lt.s32.totalorder %s1439_s11, 5 }
  0x26   : > { %p208_p7 = pnand %p1223_p5, %p207_p6 }
  0x27   : > { %s214_s24 = sand.u32 (!%p208_p7), 1, %s1431_s9   ;;  %p1224_p8 = scmp.ne.s32.totalorder (!%p208_p7), %s1218_s12, 0 }
  0x28   : > { %211 = sbr.rel (%p208_p7) target bundleno = 604 (0x25c), region = 58 }
  0x29   : > { %s1336_s25 = smul.u32 (!%p208_p7), 144, %s214_s24 }
  0x2b   : > { %s1516_s26 = scalar_lea.vmem (!%p208_p7), [#allocation4], %s1336_s25 }
  0x2f   : > { %236 = sbr.rel (%p1224_p8) target bundleno = 66 (0x42), region = 66  ;;  %vm255_vm0 = vcmask (!%p1224_p8), 7168   ;;  %v1441_v18 = vmov (!%p1224_p8), 0.0  }
  0x30   : > { %237 = vst [vmem:[#allocation2] sm:$0xff] (!%p1224_p8), %v1441_v18  ;;  %238 = vst [vmem:[#allocation2 + $0x8] sm:$0xff] (!%p1224_p8), %v1441_v18 }
  0x31   : > { %239 = vst [vmem:[#allocation2 + $0x10] sm:$0xff] (!%p1224_p8), %v1441_v18  ;;  %240 = vst [vmem:[#allocation2 + $0x18] sm:$0xff] (!%p1224_p8), %v1441_v18 }
  0x32   : > { %241 = vst [vmem:[#allocation2 + $0x20] sm:$0xff] (!%p1224_p8), %v1441_v18  ;;  %242 = vst [vmem:[#allocation2 + $0x28] sm:$0xff] (!%p1224_p8), %v1441_v18 }
  0x33   : > { %243 = vst [vmem:[#allocation2 + $0x30] sm:$0xff] (!%p1224_p8), %v1441_v18  ;;  %244 = vst [vmem:[#allocation2 + $0x38] sm:$0xff] (!%p1224_p8), %v1441_v18 }
  0x34   : > { %245 = vst [vmem:[#allocation2 + $0x40] sm:$0xff] (!%p1224_p8), %v1441_v18  ;;  %246 = vst [vmem:[#allocation2 + $0x48] sm:$0xff] (!%p1224_p8), %v1441_v18 }
  0x35   : > { %247 = vst [vmem:[#allocation2 + $0x50] sm:$0xff] (!%p1224_p8), %v1441_v18  ;;  %248 = vst [vmem:[#allocation2 + $0x58] sm:$0xff] (!%p1224_p8), %v1441_v18 }
  0x36   : > { %249 = vst [vmem:[#allocation2 + $0x60] sm:$0xff] %v1441_v18  ;;  %250 = vst [vmem:[#allocation2 + $0x68] sm:$0xff] %v1441_v18 }
  0x37   : > { %251 = vst [vmem:[#allocation2 + $0x70] sm:$0xff] %v1441_v18  ;;  %252 = vst [vmem:[#allocation2 + $0x78] sm:$0xff] %v1441_v18 }
  0x38   : > { %253 = vst [vmem:[#allocation2 + $0x80] sm:$0xff] %v1441_v18  ;;  %254 = vst [vmem:[#allocation2 + $0x88] sm:$0xff] %v1441_v18 }
  0x39   : > { %256 = vst.msk [vmem:[#allocation3] sm:$0xff] %vm255_vm0, %v1441_v18  ;;  %257 = vst.msk [vmem:[#allocation3 + $0x8] sm:$0xff] %vm255_vm0, %v1441_v18 }
  0x3a   : > { %258 = vst.msk [vmem:[#allocation3 + $0x10] sm:$0xff] %vm255_vm0, %v1441_v18  ;;  %259 = vst.msk [vmem:[#allocation3 + $0x18] sm:$0xff] %vm255_vm0, %v1441_v18 }
  0x3b   : > { %260 = vst.msk [vmem:[#allocation3 + $0x20] sm:$0xff] %vm255_vm0, %v1441_v18  ;;  %261 = vst.msk [vmem:[#allocation3 + $0x28] sm:$0xff] %vm255_vm0, %v1441_v18 }
  0x3c   : > { %262 = vst.msk [vmem:[#allocation3 + $0x30] sm:$0xff] %vm255_vm0, %v1441_v18  ;;  %263 = vst.msk [vmem:[#allocation3 + $0x38] sm:$0xff] %vm255_vm0, %v1441_v18 }
  0x3d   : > { %264 = vst.msk [vmem:[#allocation3 + $0x40] sm:$0xff] %vm255_vm0, %v1441_v18  ;;  %265 = vst.msk [vmem:[#allocation3 + $0x48] sm:$0xff] %vm255_vm0, %v1441_v18 }
  0x3e   : > { %266 = vst.msk [vmem:[#allocation3 + $0x50] sm:$0xff] %vm255_vm0, %v1441_v18  ;;  %267 = vst.msk [vmem:[#allocation3 + $0x58] sm:$0xff] %vm255_vm0, %v1441_v18 }
  0x3f   : > { %268 = vst.msk [vmem:[#allocation3 + $0x60] sm:$0xff] %vm255_vm0, %v1441_v18  ;;  %269 = vst.msk [vmem:[#allocation3 + $0x68] sm:$0xff] %vm255_vm0, %v1441_v18 }
  0x40   : > { %270 = vst.msk [vmem:[#allocation3 + $0x70] sm:$0xff] %vm255_vm0, %v1441_v18  ;;  %271 = vst.msk [vmem:[#allocation3 + $0x78] sm:$0xff] %vm255_vm0, %v1441_v18 }
  0x41   : > { %272 = vst.msk [vmem:[#allocation3 + $0x80] sm:$0xff] %vm255_vm0, %v1441_v18  ;;  %273 = vst.msk [vmem:[#allocation3 + $0x88] sm:$0xff] %vm255_vm0, %v1441_v18 }
  0x42 PF: > { %v274_v19 = vld [vmem:[%s1516_s26] sm:$0xff]  ;;  %v275_v20 = vld [vmem:[%s1516_s26 + $0x8] sm:$0xff]  ;;  %v276_v21 = vld [vmem:[%s1516_s26 + $0x10] sm:$0xff]  ;;  %v1442_v25 = vmov 1065369472   ;;  %vm790_vm1 = vcmask 7168  }
  0x43   : > { %v1226_v22 = vcombine.high %v274_v19, %v275_v20  ;;  %v1541_v23 = vcombine.low %v274_v19, %v275_v20  ;;  %v277_v24 = vld [vmem:[%s1516_s26 + $0x18] sm:$0xff]  ;;  %1265 = vmatprep.subr.bf16.mxu1 %v1442_v25  ;;  %v559_v26 = vmul.bf16 %v274_v19, %v274_v19  ;;  %v560_v27 = vmul.bf16 %v275_v20, %v275_v20  ;;  %v278_v30 = vld [vmem:[%s1516_s26 + $0x20] sm:$0xff]  ;;  %v279_v31 = vld [vmem:[%s1516_s26 + $0x28] sm:$0xff]  ;;  %p1261_p9 = scmp.ne.s32.totalorder %s1218_s12, 3 }
  0x44   : > { %v1544_v28 = vcombine.high %v276_v21, %v277_v24  ;;  %1266 = vmatpush3.bf16.msra.mxu1 %v1442_v25  ;;  %v1550_v32 = vcombine.low %v276_v21, %v277_v24  ;;  %v1552_v33 = vcombine.high %v278_v30, %v279_v31  ;;  %v280_v34 = vld [vmem:[%s1516_s26 + $0x30] sm:$0xff]  ;;  %v281_v35 = vld [vmem:[%s1516_s26 + $0x38] sm:$0xff]  ;;  %v1558_v36 = vcombine.low %v278_v30, %v279_v31  ;;  %v282_v38 = vld [vmem:[%s1516_s26 + $0x40] sm:$0xff] }
  0x45   : > { %400 = vmatprep.subr.bf16.mxu0 %v1226_v22  ;;  %1267 = vmatprep.subr.bf16.mxu1 %v1442_v25  ;;  %v1244_v29 = vcombine.high %v559_v26, %v560_v27  ;;  %v1560_v37 = vcombine.high %v280_v34, %v281_v35  ;;  %v283_v39 = vld [vmem:[%s1516_s26 + $0x48] sm:$0xff]  ;;  %v1566_v40 = vcombine.low %v280_v34, %v281_v35  ;;  %v284_v45 = vld [vmem:[%s1516_s26 + $0x50] sm:$0xff]  ;;  %v285_v46 = vld [vmem:[%s1516_s26 + $0x58] sm:$0xff] }
  0x46   : > { %401 = vmatpush1.bf16.xpose.msra.mxu0 %v1541_v23  ;;  %432 = vmatprep.mubr.bf16.mxu0 %v1226_v22  ;;  %v1568_v41 = vcombine.high %v282_v38, %v283_v39  ;;  %v561_v42 = vmul.bf16 %v276_v21, %v276_v21  ;;  %v562_v43 = vmul.bf16 %v277_v24, %v277_v24  ;;  %v286_v53 = vld [vmem:[%s1516_s26 + $0x60] sm:$0xff]  ;;  %v287_v54 = vld [vmem:[%s1516_s26 + $0x68] sm:$0xff]  ;;  %v288_v61 = vld [vmem:[%s1516_s26 + $0x70] sm:$0xff] }
  0x47   : > { %402 = vmatprep.subr.bf16.mxu0 %v1544_v28  ;;  %699 = vmatprep.mubr.bf16.mxu1 %v1244_v29  ;;  %v1243_v44 = vcombine.low %v559_v26, %v560_v27  ;;  %v1574_v48 = vcombine.low %v282_v38, %v283_v39  ;;  %v1576_v49 = vcombine.high %v284_v45, %v285_v46  ;;  %v289_v62 = vld [vmem:[%s1516_s26 + $0x78] sm:$0xff]  ;;  %v290_v19 = vld [vmem:[%s1516_s26 + $0x80] sm:$0xff]  ;;  %v291_v20 = vld [vmem:[%s1516_s26 + $0x88] sm:$0xff] }
  0x48   : > { %1268 = vmatpush3.bf16.msra.mxu1 %v1442_v25  ;;  %v1246_v47 = vcombine.high %v561_v42, %v562_v43  ;;  %v563_v50 = vmul.bf16 %v278_v30, %v278_v30  ;;  %v564_v51 = vmul.bf16 %v279_v31, %v279_v31  ;;  %v1245_v52 = vcombine.low %v561_v42, %v562_v43  ;;  %v541_v29 = vld [vmem:[#allocation3] sm:$0xff]  ;;  %v544_v43 = vld [vmem:[#allocation3 + $0x18] sm:$0xff] }
  0x49   : > { %1269 = vmatprep.subr.bf16.mxu1 %v1442_v25  ;;  %v1582_v56 = vcombine.low %v284_v45, %v285_v46  ;;  %v1584_v57 = vcombine.high %v286_v53, %v287_v54  ;;  %v565_v58 = vmul.bf16 %v280_v34, %v280_v34  ;;  %v566_v59 = vmul.bf16 %v281_v35, %v281_v35 }
  0x4a   : > { %v1248_v55 = vcombine.high %v563_v50, %v564_v51  ;;  %v1247_v60 = vcombine.low %v563_v50, %v564_v51  ;;  %v1237_v0 = vcombine.low %v286_v53, %v287_v54  ;;  %v1240_v1 = vcombine.high %v288_v61, %v289_v62 }
  0x4b   : > { %v1250_v63 = vcombine.high %v565_v58, %v566_v59  ;;  %v567_v2 = vmul.bf16 %v282_v38, %v282_v38  ;;  %v568_v3 = vmul.bf16 %v283_v39, %v283_v39  ;;  %v1249_v4 = vcombine.low %v565_v58, %v566_v59  ;;  %v543_v39 = vld [vmem:[#allocation3 + $0x10] sm:$0xff] }
  0x4c   : > { %1270 = vmatpush3.bf16.msra.mxu1 %v1442_v25  ;;  %v1239_v6 = vcombine.low %v288_v61, %v289_v62  ;;  %v569_v7 = vmul.bf16 %v284_v45, %v284_v45  ;;  %v570_v8 = vmul.bf16 %v285_v46, %v285_v46  ;;  %v571_v11 = vmul.bf16 %v286_v53, %v286_v53  ;;  %v546_v53 = vld [vmem:[#allocation3 + $0x28] sm:$0xff]  ;;  %v547_v59 = vld [vmem:[#allocation3 + $0x30] sm:$0xff] }
  0x4d   : > { %1271 = vmatprep.subr.bf16.mxu1 %v1442_v25  ;;  %v1252_v5 = vcombine.high %v567_v2, %v568_v3  ;;  %v1251_v9 = vcombine.low %v567_v2, %v568_v3  ;;  %v572_v12 = vmul.bf16 %v287_v54, %v287_v54  ;;  %v573_v15 = vmul.bf16 %v288_v61, %v288_v61 }
  0x4e   : > { %403 = vmatpush1.bf16.xpose.msra.mxu0 %v1550_v32  ;;  %v1254_v10 = vcombine.high %v569_v7, %v570_v8  ;;  %v1253_v13 = vcombine.low %v569_v7, %v570_v8  ;;  %v574_v16 = vmul.bf16 %v289_v62, %v289_v62  ;;  %v575_v21 = vmul.bf16 %v290_v19, %v290_v19 }
  0x4f   : > { %404 = vmatprep.subr.bf16.mxu0 %v1552_v33  ;;  %v1256_v14 = vcombine.high %v571_v11, %v572_v12  ;;  %v1255_v17 = vcombine.low %v571_v11, %v572_v12  ;;  %v576_v22 = vmul.bf16 %v291_v20, %v291_v20  ;;  %v1242_v26 = vcombine.high %v290_v19, %v291_v20 }
  0x50   : > { %1272 = vmatpush3.bf16.msra.mxu1 %v1442_v25  ;;  %v1258_v18 = vcombine.high %v573_v15, %v574_v16  ;;  %v1241_v27 = vcombine.low %v290_v19, %v291_v20 }
  0x51   : > { %1273 = vmatprep.subr.bf16.mxu1 %v1442_v25  ;;  %v1260_v24 = vcombine.high %v575_v21, %v576_v22 }
  0x54   : > { %1274 = vmatpush3.bf16.msra.mxu1 %v1442_v25 }
  0x55   : > { %1275 = vmatprep.subr.bf16.mxu1 %v1442_v25 }
  0x56   : > { %405 = vmatpush1.bf16.xpose.msra.mxu0 %v1558_v36 }
  0x57   : > { %406 = vmatprep.subr.bf16.mxu0 %v1560_v37 }
  0x58   : > { %1276 = vmatpush3.bf16.msra.mxu1 %v1442_v25 }
  0x59   : > { %1277 = vmatprep.subr.bf16.mxu1 %v1442_v25 }
  0x5c   : > { %1278 = vmatpush3.bf16.msra.mxu1 %v1442_v25 }
  0x5d   : > { %1279 = vmatprep.subr.bf16.mxu1 %v1442_v25 }
  0x5e   : > { %407 = vmatpush1.bf16.xpose.msra.mxu0 %v1566_v40 }
  0x5f   : > { %408 = vmatprep.subr.bf16.mxu0 %v1568_v41 }
  0x60   : > { %1280 = vmatpush3.bf16.msra.mxu1 %v1442_v25  ;;  %v1259_v25 = vcombine.low %v575_v21, %v576_v22  ;;  %v294_v22 = vld [vmem:[#allocation2 + $0x10] sm:$0xff] }
  0x63   : > { %700 = vmatmul.mubr.bf16.vlgmr.msra.gmra.mrb[0].mxu1 %v1243_v44 }
  0x64   : > { %707 = vmatprep.mubr.bf16.mxu1 %v1246_v47 }
  0x66   : > { %409 = vmatpush1.bf16.xpose.msra.mxu0 %v1574_v48 }
  0x67   : > { %410 = vmatprep.subr.bf16.mxu0 %v1576_v49 }
  0x6b   : > { %708 = vmatmul.mubr.bf16.gmra.mrb[4].mxu1 %v1245_v52 }
  0x6c   : > { %715 = vmatprep.mubr.bf16.mxu1 %v1248_v55 }
  0x6e   : > { %411 = vmatpush1.bf16.xpose.msra.mxu0 %v1582_v56 }
  0x6f   : > { %412 = vmatprep.subr.bf16.mxu0 %v1584_v57 }
  0x73   : > { %716 = vmatmul.mubr.bf16.gmra.mrb[8].mxu1 %v1247_v60 }
  0x74   : > { %723 = vmatprep.mubr.bf16.mxu1 %v1250_v63  ;;  %v548_v63 = vld [vmem:[#allocation3 + $0x38] sm:$0xff] }
  0x76   : > { %413 = vmatpush1.bf16.xpose.msra.mxu0 %v1237_v0 }
  0x77   : > { %414 = vmatprep.subr.bf16.mxu0 %v1240_v1 }
  0x7b   : > { %724 = vmatmul.mubr.bf16.gmra.mrb[12].mxu1 %v1249_v4  ;;  %v292_v4 = vld [vmem:[#allocation2] sm:$0xff] }
  0x7c   : > { %731 = vmatprep.mubr.bf16.mxu1 %v1252_v5 }
  0x7e   : > { %415 = vmatpush1.bf16.xpose.msra.mxu0 %v1239_v6 }
  0x83   : > { %732 = vmatmul.mubr.bf16.gmra.mrb[16].mxu1 %v1251_v9  ;;  %v293_v9 = vld [vmem:[#allocation2 + $0x8] sm:$0xff] }
  0x84   : > { %739 = vmatprep.mubr.bf16.mxu1 %v1254_v10 }
  0x85   : > { %433 = vmatmul.mubr.bf16.vlgmr.msra.gmra.mrb[0].mxu0 %v1541_v23  ;;  %v1257_v23 = vcombine.low %v573_v15, %v574_v16 }
  0x86   : > { %440 = vmatprep.mubr.bf16.mxu0 %v1544_v28 }
  0x8b   : > { %740 = vmatmul.mubr.bf16.gmra.mrb[20].mxu1 %v1253_v13 }
  0x8c   : > { %747 = vmatprep.mubr.bf16.mxu1 %v1256_v14  ;;  %v550_v14 = vld [vmem:[#allocation3 + $0x48] sm:$0xff] }
  0x8d   : > { %441 = vmatmul.mubr.bf16.gmra.mrb[4].mxu0 %v1550_v32 }
  0x8e   : > { %448 = vmatprep.mubr.bf16.mxu0 %v1552_v33  ;;  %v542_v33 = vld [vmem:[#allocation3 + $0x8] sm:$0xff] }
  0x93   : > { %748 = vmatmul.mubr.bf16.gmra.mrb[24].mxu1 %v1255_v17 }
  0x94   : > { %755 = vmatprep.mubr.bf16.mxu1 %v1258_v18 }
  0x95   : > { %449 = vmatmul.mubr.bf16.gmra.mrb[8].mxu0 %v1558_v36 }
  0x96   : > { %456 = vmatprep.mubr.bf16.mxu0 %v1560_v37 }
  0x9b   : > { %756 = vmatmul.mubr.bf16.gmra.mrb[28].mxu1 %v1257_v23 }
  0x9c   : > { %763 = vmatprep.mubr.bf16.mxu1 %v1260_v24  ;;  %v551_v24 = vld [vmem:[#allocation3 + $0x50] sm:$0xff] }
  0x9d   : > { %457 = vmatmul.mubr.bf16.gmra.mrb[12].mxu0 %v1566_v40 }
  0x9e   : > { %464 = vmatprep.mubr.bf16.mxu0 %v1568_v41 }
  0xa3   : > { %764 = vmatmul.mubr.bf16.gmra.mrb[32].mxu1 %v1259_v25 }
  0xa5   : > { %465 = vmatmul.mubr.bf16.gmra.mrb[16].mxu0 %v1574_v48 }
  0xa6   : > { %472 = vmatprep.mubr.bf16.mxu0 %v1576_v49  ;;  %v545_v49 = vld [vmem:[#allocation3 + $0x20] sm:$0xff] }
  0xad   : > { %473 = vmatmul.mubr.bf16.gmra.mrb[20].mxu0 %v1582_v56 }
  0xae   : > { %480 = vmatprep.mubr.bf16.mxu0 %v1584_v57 }
  0xb5   : > { %481 = vmatmul.mubr.bf16.gmra.mrb[24].mxu0 %v1237_v0 }
  0xb6   : > { %488 = vmatprep.mubr.bf16.mxu0 %v1240_v1 }
  0xbd   : > { %489 = vmatmul.mubr.bf16.gmra.mrb[28].mxu0 %v1239_v6  ;;  %v549_v6 = vld [vmem:[#allocation3 + $0x40] sm:$0xff] }
  0xbe   : > { %496 = vmatprep.mubr.bf16.mxu0 %v1242_v26 }
  0xc5   : > { %497 = vmatmul.mubr.bf16.gmra.mrb[32].mxu0 %v1241_v27  ;;  %v295_v27 = vld [vmem:[#allocation2 + $0x18] sm:$0xff] }
 0x136   : > { %v1281_v28 = vpop.f32.mrb[0].mxu1 }
 0x137   : > { %v1282_v30 = vpop.f32.mrb[1].mxu1 }
 0x138   : > { %v1283_v31 = vadd.f32 %v1282_v30, %v1281_v28  ;;  %v1284_v32 = vpop.f32.mrb[2].mxu1 }
 0x139   : > { %v1285_v34 = vpop.f32.mrb[3].mxu1 }
 0x13a   : > { %v772_v35 = vadd.f32 %v1283_v31, %v541_v29  ;;  %v1286_v36 = vadd.f32 %v1285_v34, %v1284_v32  ;;  %v552_v32 = vld [vmem:[#allocation3 + $0x58] sm:$0xff] }
 0x13c   : > { %791 = vst.msk [vmem:[#allocation3] sm:$0xff] %vm790_vm1, %v772_v35  ;;  %v773_v37 = vadd.f32 %v1286_v36, %v542_v33 }
 0x13e   : > { %792 = vst.msk [vmem:[#allocation3 + $0x8] sm:$0xff] %vm790_vm1, %v773_v37  ;;  %v1287_v38 = vpop.f32.mrb[4].mxu1 }
 0x13f   : > { %v1288_v40 = vpop.f32.mrb[5].mxu1 }
 0x140   : > { %v1289_v41 = vadd.f32 %v1288_v40, %v1287_v38  ;;  %v1290_v42 = vpop.f32.mrb[6].mxu1  ;;  %v296_v40 = vld [vmem:[#allocation2 + $0x20] sm:$0xff] }
 0x141   : > { %v1291_v44 = vpop.f32.mrb[7].mxu1 }
 0x142   : > { %v774_v45 = vadd.f32 %v1289_v41, %v543_v39  ;;  %v1292_v46 = vadd.f32 %v1291_v44, %v1290_v42  ;;  %v553_v42 = vld [vmem:[#allocation3 + $0x60] sm:$0xff] }
 0x144   : > { %793 = vst.msk [vmem:[#allocation3 + $0x10] sm:$0xff] %vm790_vm1, %v774_v45  ;;  %v775_v47 = vadd.f32 %v1292_v46, %v544_v43  ;;  %v297_v45 = vld [vmem:[#allocation2 + $0x28] sm:$0xff] }
 0x146   : > { %794 = vst.msk [vmem:[#allocation3 + $0x18] sm:$0xff] %vm790_vm1, %v775_v47  ;;  %v1293_v48 = vpop.f32.mrb[8].mxu1 }
 0x147   : > { %v1294_v50 = vpop.f32.mrb[9].mxu1 }
 0x148   : > { %v1295_v51 = vadd.f32 %v1294_v50, %v1293_v48  ;;  %v1296_v52 = vpop.f32.mrb[10].mxu1  ;;  %v554_v50 = vld [vmem:[#allocation3 + $0x68] sm:$0xff] }
 0x149   : > { %v1297_v54 = vpop.f32.mrb[11].mxu1 }
 0x14a   : > { %v776_v55 = vadd.f32 %v1295_v51, %v545_v49  ;;  %v1298_v56 = vadd.f32 %v1297_v54, %v1296_v52 }
 0x14c   : > { %795 = vst.msk [vmem:[#allocation3 + $0x20] sm:$0xff] %vm790_vm1, %v776_v55  ;;  %v777_v57 = vadd.f32 %v1298_v56, %v546_v53 }
 0x14e   : > { %796 = vst.msk [vmem:[#allocation3 + $0x28] sm:$0xff] %vm790_vm1, %v777_v57  ;;  %v1299_v58 = vpop.f32.mrb[12].mxu1 }
 0x14f   : > { %v1300_v60 = vpop.f32.mrb[13].mxu1 }
 0x150   : > { %v1301_v61 = vadd.f32 %v1300_v60, %v1299_v58  ;;  %v1302_v62 = vpop.f32.mrb[14].mxu1  ;;  %v298_v58 = vld [vmem:[#allocation2 + $0x30] sm:$0xff]  ;;  %v555_v60 = vld [vmem:[#allocation3 + $0x70] sm:$0xff] }
 0x151   : > { %v1303_v0 = vpop.f32.mrb[15].mxu1 }
 0x152   : > { %v778_v1 = vadd.f32 %v1301_v61, %v547_v59  ;;  %v1304_v2 = vadd.f32 %v1303_v0, %v1302_v62 }
 0x154   : > { %797 = vst.msk [vmem:[#allocation3 + $0x30] sm:$0xff] %vm790_vm1, %v778_v1  ;;  %v779_v3 = vadd.f32 %v1304_v2, %v548_v63  ;;  %v299_v63 = vld [vmem:[#allocation2 + $0x38] sm:$0xff] }
 0x156   : > { %798 = vst.msk [vmem:[#allocation3 + $0x38] sm:$0xff] %vm790_vm1, %v779_v3  ;;  %v1305_v5 = vpop.f32.mrb[16].mxu1 }
 0x157   : > { %v1306_v7 = vpop.f32.mrb[17].mxu1 }
 0x158   : > { %v434_v8 = vpop.f32.mrb[0].mxu0  ;;  %v1307_v10 = vadd.f32 %v1306_v7, %v1305_v5  ;;  %v1308_v11 = vpop.f32.mrb[18].mxu1 }
 0x159   : > { %v505_v12 = vadd.f32 %v434_v8, %v292_v4  ;;  %v436_v13 = vpop.f32.mrb[1].mxu0  ;;  %v1309_v15 = vpop.f32.mrb[19].mxu1  ;;  %v556_v4 = vld [vmem:[#allocation3 + $0x78] sm:$0xff] }
 0x15a   : > { %v437_v16 = vpop.f32.mrb[2].mxu0  ;;  %v780_v17 = vadd.f32 %v1307_v10, %v549_v6  ;;  %v1310_v18 = vadd.f32 %v1309_v15, %v1308_v11 }
 0x15b   : > { %523 = vst [vmem:[#allocation2] sm:$0xff] %v505_v12  ;;  %v506_v19 = vadd.f32 %v437_v16, %v293_v9  ;;  %v439_v20 = vpop.f32.mrb[3].mxu0  ;;  %v300_v12 = vld [vmem:[#allocation2 + $0x40] sm:$0xff] }
 0x15c   : > { %799 = vst.msk [vmem:[#allocation3 + $0x40] sm:$0xff] %vm790_vm1, %v780_v17  ;;  %v781_v21 = vadd.f32 %v1310_v18, %v550_v14  ;;  %v557_v14 = vld [vmem:[#allocation3 + $0x80] sm:$0xff]  ;;  %v301_v17 = vld [vmem:[#allocation2 + $0x48] sm:$0xff] }
 0x15d   : > { %524 = vst [vmem:[#allocation2 + $0x8] sm:$0xff] %v506_v19 }
 0x15e   : > { %800 = vst.msk [vmem:[#allocation3 + $0x48] sm:$0xff] %vm790_vm1, %v781_v21  ;;  %v1311_v23 = vpop.f32.mrb[20].mxu1 }
 0x15f   : > { %v1312_v25 = vpop.f32.mrb[21].mxu1 }
 0x160   : > { %v442_v26 = vpop.f32.mrb[4].mxu0  ;;  %v1313_v28 = vadd.f32 %v1312_v25, %v1311_v23  ;;  %v1314_v29 = vpop.f32.mrb[22].mxu1 }
 0x161   : > { %v507_v30 = vadd.f32 %v442_v26, %v294_v22  ;;  %v444_v31 = vpop.f32.mrb[5].mxu0  ;;  %v1315_v33 = vpop.f32.mrb[23].mxu1  ;;  %v558_v22 = vld [vmem:[#allocation3 + $0x88] sm:$0xff] }
 0x162   : > { %v445_v34 = vpop.f32.mrb[6].mxu0  ;;  %v782_v35 = vadd.f32 %v1313_v28, %v551_v24  ;;  %v1316_v36 = vadd.f32 %v1315_v33, %v1314_v29 }
 0x163   : > { %525 = vst [vmem:[#allocation2 + $0x10] sm:$0xff] %v507_v30  ;;  %v508_v37 = vadd.f32 %v445_v34, %v295_v27  ;;  %v447_v38 = vpop.f32.mrb[7].mxu0  ;;  %v302_v30 = vld [vmem:[#allocation2 + $0x50] sm:$0xff] }
 0x164   : > { %801 = vst.msk [vmem:[#allocation3 + $0x50] sm:$0xff] %vm790_vm1, %v782_v35  ;;  %v783_v39 = vadd.f32 %v1316_v36, %v552_v32  ;;  %v303_v32 = vld [vmem:[#allocation2 + $0x58] sm:$0xff]  ;;  %v304_v38 = vld [vmem:[#allocation2 + $0x60] sm:$0xff] }
 0x165   : > { %526 = vst [vmem:[#allocation2 + $0x18] sm:$0xff] %v508_v37 }
 0x166   : > { %802 = vst.msk [vmem:[#allocation3 + $0x58] sm:$0xff] %vm790_vm1, %v783_v39  ;;  %v1317_v41 = vpop.f32.mrb[24].mxu1 }
 0x167   : > { %v1318_v43 = vpop.f32.mrb[25].mxu1 }
 0x168   : > { %v450_v44 = vpop.f32.mrb[8].mxu0  ;;  %v1319_v46 = vadd.f32 %v1318_v43, %v1317_v41  ;;  %v1320_v47 = vpop.f32.mrb[26].mxu1 }
 0x169   : > { %v509_v48 = vadd.f32 %v450_v44, %v296_v40  ;;  %v452_v49 = vpop.f32.mrb[9].mxu0  ;;  %v1321_v51 = vpop.f32.mrb[27].mxu1  ;;  %v305_v40 = vld [vmem:[#allocation2 + $0x68] sm:$0xff] }
 0x16a   : > { %v453_v52 = vpop.f32.mrb[10].mxu0  ;;  %v784_v53 = vadd.f32 %v1319_v46, %v553_v42  ;;  %v1322_v54 = vadd.f32 %v1321_v51, %v1320_v47  ;;  %v306_v46 = vld [vmem:[#allocation2 + $0x70] sm:$0xff] }
 0x16b   : > { %527 = vst [vmem:[#allocation2 + $0x20] sm:$0xff] %v509_v48  ;;  %v510_v55 = vadd.f32 %v453_v52, %v297_v45  ;;  %v455_v56 = vpop.f32.mrb[11].mxu0  ;;  %v307_v48 = vld [vmem:[#allocation2 + $0x78] sm:$0xff] }
 0x16c   : > { %803 = vst.msk [vmem:[#allocation3 + $0x60] sm:$0xff] %vm790_vm1, %v784_v53  ;;  %v785_v57 = vadd.f32 %v1322_v54, %v554_v50  ;;  %v308_v54 = vld [vmem:[#allocation2 + $0x80] sm:$0xff]  ;;  %v309_v56 = vld [vmem:[#allocation2 + $0x88] sm:$0xff] }
 0x16d   : > { %528 = vst [vmem:[#allocation2 + $0x28] sm:$0xff] %v510_v55 }
 0x16e   : > { %804 = vst.msk [vmem:[#allocation3 + $0x68] sm:$0xff] %vm790_vm1, %v785_v57  ;;  %v1323_v59 = vpop.f32.mrb[28].mxu1 }
 0x16f   : > { %v1324_v61 = vpop.f32.mrb[29].mxu1 }
 0x170   : > { %v458_v62 = vpop.f32.mrb[12].mxu0  ;;  %v1325_v0 = vadd.f32 %v1324_v61, %v1323_v59  ;;  %v1326_v1 = vpop.f32.mrb[30].mxu1 }
 0x171   : > { %v511_v2 = vadd.f32 %v458_v62, %v298_v58  ;;  %v460_v3 = vpop.f32.mrb[13].mxu0  ;;  %v1327_v5 = vpop.f32.mrb[31].mxu1 }
 0x172   : > { %v461_v6 = vpop.f32.mrb[14].mxu0  ;;  %v786_v7 = vadd.f32 %v1325_v0, %v555_v60  ;;  %v1328_v8 = vadd.f32 %v1327_v5, %v1326_v1  ;;  %v1443_v0 = vmov (!%p1261_p9), 0   ;;  %v1624_v1 = vld [vmem:[#allocation2] sm:$0xff] (!%p1261_p9)  ;;  %v1632_v5 = vld [vmem:[#allocation2 + $0x8] sm:$0xff] (!%p1261_p9) }
 0x173   : > { %529 = vst [vmem:[#allocation2 + $0x30] sm:$0xff] %v511_v2  ;;  %v512_v9 = vadd.f32 %v461_v6, %v299_v63  ;;  %v463_v10 = vpop.f32.mrb[15].mxu0  ;;  %v833_v63 = vlaneseq (!%p1261_p9)  ;;  %1382 = vset.pattern.permute.xlu0 (!%p1261_p9), %v1443_v0 }
 0x174   : > { %805 = vst.msk [vmem:[#allocation3 + $0x70] sm:$0xff] %vm790_vm1, %v786_v7  ;;  %v787_v11 = vadd.f32 %v1328_v8, %v556_v4 }
 0x175   : > { %530 = vst [vmem:[#allocation2 + $0x38] sm:$0xff] %v512_v9  ;;  %v1626_v2 = vshrl.u32 (!%p1261_p9), %v833_v63, 7  ;;  %v1628_v3 = vand.u32 (!%p1261_p9), 127, %v833_v63 }
 0x176   : > { %806 = vst.msk [vmem:[#allocation3 + $0x78] sm:$0xff] %vm790_vm1, %v787_v11  ;;  %v1329_v13 = vpop.f32.mrb[32].mxu1  ;;  %v1650_v11 = vld [vmem:[#allocation2 + $0x18] sm:$0xff] (!%p1261_p9) }
 0x177   : > { %v1330_v15 = vpop.f32.mrb[33].mxu1  ;;  %vm852_vm2 = vcmp.eq.s32.totalorder (!%p1261_p9), %v1626_v2, %v1628_v3  ;;  %v1635_v6 = vadd.s32 (!%p1261_p9), 8, %v1626_v2  ;;  %v1638_v7 = vadd.s32 (!%p1261_p9), 24, %v1626_v2 }
 0x178   : > { %v466_v16 = vpop.f32.mrb[16].mxu0  ;;  %v1331_v18 = vadd.f32 %v1330_v15, %v1329_v13  ;;  %v1332_v19 = vpop.f32.mrb[34].mxu1  ;;  %v868_v8 = vsel (!%p1261_p9), %vm852_vm2, %v1624_v1, 0.0  ;;  %v1657_v13 = vld [vmem:[#allocation2 + $0x10] sm:$0xff] (!%p1261_p9) }
 0x179   : > { %v513_v20 = vadd.f32 %v466_v16, %v300_v12  ;;  %v468_v21 = vpop.f32.mrb[17].mxu0  ;;  %v1333_v23 = vpop.f32.mrb[35].mxu1  ;;  %884 = vadd.xlane.f32.xlu1 (!%p1261_p9), %v868_v8  ;;  %vm853_vm3 = vcmp.eq.s32.totalorder (!%p1261_p9), %v1635_v6, %v1628_v3  ;;  %vm855_vm4 = vcmp.eq.s32.totalorder (!%p1261_p9), %v1638_v7, %v1628_v3  ;;  %v1655_v12 = vadd.s32 (!%p1261_p9), 32, %v1626_v2  ;;  %v1666_v16 = vld [vmem:[#allocation2 + $0x20] sm:$0xff] (!%p1261_p9) }
 0x17a   : > { %v469_v24 = vpop.f32.mrb[18].mxu0  ;;  %v788_v25 = vadd.f32 %v1331_v18, %v557_v14  ;;  %v1334_v26 = vadd.f32 %v1333_v23, %v1332_v19  ;;  %v869_v9 = vsel (!%p1261_p9), %vm853_vm3, %v1632_v5, 0.0  ;;  %v1660_v14 = vadd.s32 (!%p1261_p9), 16, %v1626_v2 }
 0x17b   : > { %531 = vst [vmem:[#allocation2 + $0x40] sm:$0xff] %v513_v20  ;;  %v514_v27 = vadd.f32 %v469_v24, %v301_v17  ;;  %v471_v28 = vpop.f32.mrb[19].mxu0  ;;  %v916_v10 = vadd.f32 (!%p1261_p9), %v869_v9, %v868_v8  ;;  %v871_v15 = vsel (!%p1261_p9), %vm855_vm4, %v1650_v11, 0.0  ;;  %vm856_vm5 = vcmp.eq.s32.totalorder (!%p1261_p9), %v1655_v12, %v1628_v3 }
 0x17c   : > { %807 = vst.msk [vmem:[#allocation3 + $0x80] sm:$0xff] %vm790_vm1, %v788_v25  ;;  %v789_v29 = vadd.f32 %v1334_v26, %v558_v22  ;;  %v1671_v17 = vadd.s32 (!%p1261_p9), 40, %v1626_v2  ;;  %vm854_vm6 = vcmp.eq.s32.totalorder (!%p1261_p9), %v1660_v14, %v1628_v3  ;;  %v1680_v19 = vadd.s32 (!%p1261_p9), 48, %v1626_v2  ;;  %v1686_v22 = vld [vmem:[#allocation2 + $0x28] sm:$0xff] (!%p1261_p9)  ;;  %v1693_v25 = vld [vmem:[#allocation2 + $0x30] sm:$0xff] (!%p1261_p9) }
 0x17d   : > { %532 = vst [vmem:[#allocation2 + $0x48] sm:$0xff] %v514_v27  ;;  %886 = vadd.xlane.f32.xlu1 (!%p1261_p9), %v869_v9  ;;  %v870_v18 = vsel (!%p1261_p9), %vm854_vm6, %v1657_v13, 0.0  ;;  %v872_v21 = vsel (!%p1261_p9), %vm856_vm5, %v1666_v16, 0.0  ;;  %v1691_v23 = vadd.s32 (!%p1261_p9), 56, %v1626_v2  ;;  %v1698_v26 = vadd.s32 (!%p1261_p9), 64, %v1626_v2 }
 0x17e   : > { %808 = vst.msk [vmem:[#allocation3 + $0x88] sm:$0xff] %vm790_vm1, %v789_v29  ;;  %v917_v20 = vadd.f32 (!%p1261_p9), %v916_v10, %v870_v18  ;;  %vm857_vm7 = vcmp.eq.s32.totalorder (!%p1261_p9), %v1671_v17, %v1628_v3  ;;  %vm858_vm8 = vcmp.eq.s32.totalorder (!%p1261_p9), %v1680_v19, %v1628_v3  ;;  %v1704_v29 = vld [vmem:[#allocation2 + $0x38] sm:$0xff] (!%p1261_p9) }
 0x17f   : > { %v873_v28 = vsel (!%p1261_p9), %vm857_vm7, %v1686_v22, 0.0  ;;  %vm859_vm9 = vcmp.eq.s32.totalorder (!%p1261_p9), %v1691_v23, %v1628_v3  ;;  %vm860_vm10 = vcmp.eq.s32.totalorder (!%p1261_p9), %v1698_v26, %v1628_v3 }
 0x180   : > { %v474_v31 = vpop.f32.mrb[20].mxu0  ;;  %v918_v24 = vadd.f32 (!%p1261_p9), %v917_v20, %v871_v15 }
 0x181   : > { %v515_v33 = vadd.f32 %v474_v31, %v302_v30  ;;  %v476_v34 = vpop.f32.mrb[21].mxu0  ;;  %890 = vadd.xlane.f32.xlu1 (!%p1261_p9), %v871_v15  ;;  %v1709_v31 = vadd.s32 (!%p1261_p9), 72, %v1626_v2 }
 0x182   : > { %v477_v35 = vpop.f32.mrb[22].mxu0  ;;  %v919_v27 = vadd.f32 (!%p1261_p9), %v918_v24, %v872_v21 }
 0x183   : > { %533 = vst [vmem:[#allocation2 + $0x50] sm:$0xff] %v515_v33  ;;  %v516_v36 = vadd.f32 %v477_v35, %v303_v32  ;;  %v479_v37 = vpop.f32.mrb[23].mxu0  ;;  %v831_v62 = vld [vmem:[#allocation3 + $0x80] sm:$0xff] (!%p1261_p9)  ;;  %v874_v32 = vsel (!%p1261_p9), %vm858_vm8, %v1693_v25, 0.0  ;;  %v1715_v33 = vld [vmem:[#allocation2 + $0x40] sm:$0xff] (!%p1261_p9)  ;;  %v1720_v35 = vadd.s32 (!%p1261_p9), 80, %v1626_v2  ;;  %vm861_vm11 = vcmp.eq.s32.totalorder (!%p1261_p9), %v1709_v31, %v1628_v3 }
 0x184   : > { %1147 = vperm.xlu0 (!%p1261_p9), %1382, %v831_v62   ;;  %v920_v30 = vadd.f32 (!%p1261_p9), %v919_v27, %v873_v28  ;;  %v1726_v37 = vld [vmem:[#allocation2 + $0x48] sm:$0xff] (!%p1261_p9) }
 0x185   : > { %534 = vst [vmem:[#allocation2 + $0x58] sm:$0xff] %v516_v36  ;;  %v832_v4 = vld [vmem:[#allocation3 + $0x88] sm:$0xff] (!%p1261_p9)  ;;  %892 = vadd.xlane.f32.xlu1 (!%p1261_p9), %v872_v21  ;;  %v875_v36 = vsel (!%p1261_p9), %vm859_vm9, %v1704_v29, 0.0  ;;  %vm862_vm12 = vcmp.eq.s32.totalorder (!%p1261_p9), %v1720_v35, %v1628_v3 }
 0x186   : > { %v921_v34 = vadd.f32 (!%p1261_p9), %v920_v30, %v874_v32 }
 0x188   : > { %v482_v39 = vpop.f32.mrb[24].mxu0  ;;  %1152 = vperm.xlu0 (!%p1261_p9), %1382, %v832_v4  }
 0x189   : > { %v517_v41 = vadd.f32 %v482_v39, %v304_v38  ;;  %v484_v42 = vpop.f32.mrb[25].mxu0  ;;  %894 = vadd.xlane.f32.xlu1 (!%p1261_p9), %v873_v28  ;;  %v922_v38 = vadd.f32 (!%p1261_p9), %v921_v34, %v875_v36  ;;  %v1731_v39 = vadd.s32 (!%p1261_p9), 88, %v1626_v2 }
 0x18a   : > { %v485_v43 = vpop.f32.mrb[26].mxu0  ;;  %v1737_v42 = vld [vmem:[#allocation2 + $0x50] sm:$0xff] (!%p1261_p9) }
 0x18b   : > { %535 = vst [vmem:[#allocation2 + $0x60] sm:$0xff] %v517_v41  ;;  %v518_v44 = vadd.f32 %v485_v43, %v305_v40  ;;  %v487_v45 = vpop.f32.mrb[27].mxu0  ;;  %v876_v40 = vsel (!%p1261_p9), %vm860_vm10, %v1715_v33, 0.0  ;;  %v1742_v43 = vadd.s32 (!%p1261_p9), 96, %v1626_v2  ;;  %vm863_vm13 = vcmp.eq.s32.totalorder (!%p1261_p9), %v1731_v39, %v1628_v3 }
 0x18c   : > { %v923_v41 = vadd.f32 (!%p1261_p9), %v922_v38, %v876_v40 }
 0x18d   : > { %536 = vst [vmem:[#allocation2 + $0x68] sm:$0xff] %v518_v44  ;;  %896 = vadd.xlane.f32.xlu1 (!%p1261_p9), %v874_v32  ;;  %v877_v44 = vsel (!%p1261_p9), %vm861_vm11, %v1726_v37, 0.0  ;;  %vm864_vm14 = vcmp.eq.s32.totalorder (!%p1261_p9), %v1742_v43, %v1628_v3 }
 0x18e   : > { %v924_v45 = vadd.f32 (!%p1261_p9), %v923_v41, %v877_v44 }
 0x190   : > { %v490_v47 = vpop.f32.mrb[28].mxu0 }
 0x191   : > { %v519_v49 = vadd.f32 %v490_v47, %v306_v46  ;;  %v492_v50 = vpop.f32.mrb[29].mxu0  ;;  %v1748_v46 = vld [vmem:[#allocation2 + $0x58] sm:$0xff] (!%p1261_p9)  ;;  %v1753_v47 = vadd.s32 (!%p1261_p9), 104, %v1626_v2  ;;  %898 = vadd.xlane.f32.xlu1 (!%p1261_p9), %v875_v36 }
 0x192   : > { %v493_v51 = vpop.f32.mrb[30].mxu0  ;;  %v1759_v50 = vld [vmem:[#allocation2 + $0x60] sm:$0xff] (!%p1261_p9) }
 0x193   : > { %537 = vst [vmem:[#allocation2 + $0x70] sm:$0xff] %v519_v49  ;;  %v520_v52 = vadd.f32 %v493_v51, %v307_v48  ;;  %v495_v53 = vpop.f32.mrb[31].mxu0  ;;  %v878_v48 = vsel (!%p1261_p9), %vm862_vm12, %v1737_v42, 0.0  ;;  %v1764_v51 = vadd.s32 (!%p1261_p9), 112, %v1626_v2  ;;  %vm865_vm15 = vcmp.eq.s32.totalorder (!%p1261_p9), %v1753_v47, %v1628_v3 }
 0x194   : > { %v925_v49 = vadd.f32 (!%p1261_p9), %v924_v45, %v878_v48  ;;  %v1770_v53 = vld [vmem:[#allocation2 + $0x68] sm:$0xff] (!%p1261_p9) }
 0x195   : > { %538 = vst [vmem:[#allocation2 + $0x78] sm:$0xff] %v520_v52  ;;  %v879_v52 = vsel (!%p1261_p9), %vm863_vm13, %v1748_v46, 0.0  ;;  %900 = vadd.xlane.f32.xlu1 (!%p1261_p9), %v876_v40  ;;  %vm2021_vm0 = vcmp.eq.s32.totalorder (!%p1261_p9), %v1764_v51, %v1628_v3 }
 0x197   : > { %812 = sbr.rel (%p1261_p9) target bundleno = 604 (0x25c), region = 70 }
 0x198   : > { %v498_v55 = vpop.f32.mrb[32].mxu0 }
 0x199   : > { %v521_v57 = vadd.f32 %v498_v55, %v308_v54  ;;  %v500_v58 = vpop.f32.mrb[33].mxu0  ;;  %v926_v54 = vadd.f32 (!%p1261_p9), %v925_v49, %v879_v52  ;;  %v1775_v55 = vadd.s32 (!%p1261_p9), 120, %v1626_v2  ;;  %902 = vadd.xlane.f32.xlu1 (!%p1261_p9), %v877_v44  ;;  %v958_v2 = vmul.f32 (!%p1261_p9), 2.0, %v1686_v22 }
 0x19a   : > { %v501_v59 = vpop.f32.mrb[34].mxu0  ;;  %v1781_v58 = vld [vmem:[#allocation2 + $0x70] sm:$0xff] (!%p1261_p9) }
 0x19b   : > { %539 = vst [vmem:[#allocation2 + $0x80] sm:$0xff] %v521_v57  ;;  %v522_v60 = vadd.f32 %v501_v59, %v309_v56  ;;  %v503_v61 = vpop.f32.mrb[35].mxu0  ;;  %v880_v56 = vsel (!%p1261_p9), %vm864_vm14, %v1759_v50, 0.0  ;;  %v881_v59 = vsel (!%p1261_p9), %vm865_vm15, %v1770_v53, 0.0  ;;  %vm867_vm1 = vcmp.eq.s32.totalorder (!%p1261_p9), %v1775_v55, %v1628_v3 }
 0x19c   : > { %v927_v57 = vadd.f32 (!%p1261_p9), %v926_v54, %v880_v56  ;;  %v882_v62 = vsel (!%p1261_p9), %vm2021_vm0, %v1781_v58, 0.0 }
 0x19d   : > { %540 = vst [vmem:[#allocation2 + $0x88] sm:$0xff] %v522_v60  ;;  %v1789_v60 = vld [vmem:[#allocation2 + $0x78] sm:$0xff] (!%p1261_p9)  ;;  %904 = vadd.xlane.f32.xlu1 (!%p1261_p9), %v878_v48 }
 0x19e   : > { %v928_v61 = vadd.f32 %v927_v57, %v881_v59  ;;  %v883_v0 = vsel %vm867_vm1, %v1789_v60, 0.0  ;;  %v968_v39 = vmul.f32 2.0, %v1789_v60 }
 0x1a0   : > { %v929_v63 = vadd.f32 %v928_v61, %v882_v62 }
 0x1a1   : > { %908 = vadd.xlane.f32.xlu1 %v880_v56 }
 0x1a2   : > { %v930_v4 = vadd.f32 %v929_v63, %v883_v0  ;;  %v829_v21 = vld [vmem:[#allocation2 + $0x80] sm:$0xff]  ;;  %v954_v63 = vmul.f32 2.0, %v1632_v5  ;;  %v957_v5 = vmul.f32 2.0, %v1666_v16 }
 0x1a3   : > { %v1157_v30 = vmul.f32 2.0, %v829_v21 }
 0x1a4   : > { %v931_v8 = vrot.slane %v930_v4, 4  ;;  %v830_v27 = vld [vmem:[#allocation2 + $0x88] sm:$0xff] }
 0x1a5   : > { %912 = vadd.xlane.f32.xlu1 %v882_v62  ;;  %v1158_v32 = vmul.f32 2.0, %v830_v27 }
 0x1a6   : > { %v932_v9 = vadd.f32 %v931_v8, %v930_v4 }
 0x1a7   : > { %888 = vadd.xlane.f32.xlu0 %v870_v18 }
 0x1a8   : > { %v933_v10 = vrot.slane %v932_v9, 2 }
 0x1aa   : > { %v934_v15 = vadd.f32 %v933_v10, %v932_v9  ;;  %v956_v10 = vmul.f32 2.0, %v1650_v11 }
 0x1ab   : > { %906 = vadd.xlane.f32.xlu0 %v879_v52  ;;  %v953_v52 = vmul.f32 2.0, %v1624_v1 }
 0x1ac   : > { %v935_v18 = vrot.slane %v934_v15, 1 }
 0x1ae   : > { %v1801_v20 = vadd.f32 %v935_v18, %v934_v15 }
 0x1af   : > { %910 = vadd.xlane.f32.xlu0 %v881_v59 }
 0x1b3   : > { %914 = vadd.xlane.f32.xlu0 %v883_v0 }
 0x203   : > { %v1148_v24 = vpop.permute.xlu0 %1147 }
 0x204   : > { %v1155_v28 = vadd.f32 %v1148_v24, %v1801_v20 }
 0x206   : > { %v1159_v36 = vsub.f32 %v1155_v28, %v1157_v30  ;;  %v885_v56 = vpop.xlane.xlu1 %884 }
 0x207   : > { %v1153_v34 = vpop.permute.xlu0 %1152  ;;  %v937_v59 = vadd.f32 %v1801_v20, %v885_v56 }
 0x208   : > { %v1156_v38 = vadd.f32 %v1153_v34, %v1801_v20  ;;  %v1161_v41 = vmax.f32 %v1159_v36, 0.0 }
 0x209   : > { %v969_v62 = vsub.f32 %v937_v59, %v953_v52 }
 0x20a   : > { %v1160_v40 = vsub.f32 %v1156_v38, %v1158_v32  ;;  %v887_v0 = vpop.xlane.xlu1 %886 }
 0x20b   : > { %v985_v8 = vmax.f32 %v969_v62, 0.0  ;;  %v938_v9 = vadd.f32 %v1801_v20, %v887_v0 }
 0x20c   : > { %v1162_v44 = vmax.f32 %v1160_v40, 0.0 }
 0x20d   : > { %v1001_v1 = vsel %vm852_vm2, 0.0, %v985_v8  ;;  %v970_v15 = vsub.f32 %v938_v9, %v954_v63  ;;  %v960_v63 = vmul.f32 2.0, %v1704_v29 }
 0x20e   : > { %v1163_v45 = vmin.f32 %v1161_v41, %v1162_v44  ;;  %v891_v18 = vpop.xlane.xlu1 %890  ;;  %vm1021_vm0 = vcmp.eq.f32.partialorder %v1001_v1, 0.0 }
 0x20f   : > { %v986_v21 = vmax.f32 %v970_v15, 0.0  ;;  %v940_v24 = vadd.f32 %v1801_v20, %v891_v18 }
 0x210   : > { %v1164_v48 = vrot.slane %v1163_v45, 4 }
 0x211   : > { %v1002_v27 = vsel %vm853_vm3, 0.0, %v986_v21  ;;  %v972_v28 = vsub.f32 %v940_v24, %v956_v10  ;;  %v961_v24 = vmul.f32 2.0, %v1715_v33 }
 0x212   : > { %v1165_v49 = vmin.f32 %v1163_v45, %v1164_v48  ;;  %v893_v30 = vpop.xlane.xlu1 %892  ;;  %v959_v45 = vmul.f32 2.0, %v1693_v25  ;;  %v1029_v10 = vand.u32 2147483648, %v1002_v27 }
 0x213   : > { %v988_v11 = vmax.f32 %v972_v28, 0.0  ;;  %v941_v32 = vadd.f32 %v1801_v20, %v893_v30 }
 0x214   : > { %v1166_v54 = vrot.slane %v1165_v49, 2 }
 0x215   : > { %v1004_v34 = vsel %vm855_vm4, 0.0, %v988_v11  ;;  %v973_v36 = vsub.f32 %v941_v32, %v957_v5  ;;  %vm1019_vm4 = vcmp.eq.f32.partialorder %v1001_v1, inf }
 0x216   : > { %v1167_v57 = vmin.f32 %v1165_v49, %v1166_v54  ;;  %v895_v38 = vpop.xlane.xlu1 %894  ;;  %v1043_v11 = vand.u32 2147483648, %v1004_v34 }
 0x217   : > { %v989_v41 = vmax.f32 %v973_v36, 0.0  ;;  %v942_v6 = vadd.f32 %v1801_v20, %v895_v38  ;;  %v962_v38 = vmul.f32 2.0, %v1726_v37 }
 0x218   : > { %v1168_v61 = vrot.slane %v1167_v57, 1 }
 0x219   : > { %v1828_v7 = vsel %vm856_vm5, 0.0, %v989_v41  ;;  %v974_v52 = vsub.f32 %v942_v6, %v958_v2  ;;  %vm1026_vm5 = vcmp.eq.f32.partialorder %v1002_v27, inf }
 0x21a   : > { %v1169_v4 = vmin.f32 %v1167_v57, %v1168_v61  ;;  %v897_v54 = vpop.xlane.xlu1 %896  ;;  %v1022_v57 = vand.u32 2147483648, %v1001_v1  ;;  %v1050_v37 = vand.u32 2147483648, %v1828_v7 }
 0x21b   : > { %v990_v59 = vmax.f32 %v974_v52, 0.0  ;;  %v943_v61 = vadd.f32 %v1801_v20, %v897_v54 }
 0x21c   : > { %1383 = vrsqrt.f32 %v1169_v4  ;;  %vm1172_vm2 = vcmp.eq.f32.partialorder %v1169_v4, inf  ;;  %vm1174_vm3 = vcmp.eq.f32.partialorder %v1169_v4, 0.0  ;;  %v1175_v48 = vand.u32 2147483648, %v1169_v4 }
 0x21d   : > { %1385 = vrsqrt.f32 %v1001_v1  ;;  %v975_v8 = vsub.f32 %v943_v61, %v959_v45 }
 0x21e   : > { %1387 = vrsqrt.f32 %v1002_v27  ;;  %v899_v9 = vpop.xlane.xlu1 %898 }
 0x21f   : > { %1389 = vrsqrt.f32 %v1004_v34  ;;  %v991_v15 = vmax.f32 %v975_v8, 0.0  ;;  %v944_v29 = vadd.f32 %v1801_v20, %v899_v9  ;;  %v966_v8 = vmul.f32 2.0, %v1770_v53 }
 0x220   : > { %1391 = vrsqrt.f32 %v1828_v7 }
 0x221   : > { %v1853_v5 = vsel %vm858_vm8, 0.0, %v991_v15  ;;  %v976_v28 = vsub.f32 %v944_v29, %v960_v63  ;;  %vm1047_vm8 = vcmp.eq.f32.partialorder %v1828_v7, inf }
 0x222   : > { %v901_v30 = vpop.xlane.xlu1 %900  ;;  %v1064_v53 = vand.u32 2147483648, %v1853_v5 }
 0x223   : > { %v992_v33 = vmax.f32 %v976_v28, 0.0  ;;  %v945_v2 = vadd.f32 %v1801_v20, %v901_v30 }
 0x226   : > { %v1384_v40 = vpop.eup %1383  ;;  %v903_v6 = vpop.xlane.xlu1 %902 }
 0x227   : > { %v1171_v16 = vmul.f32 %v1384_v40, %v1169_v4  ;;  %v1386_v44 = vpop.eup %1385  ;;  %v946_v23 = vadd.f32 %v1801_v20, %v903_v6 }
 0x228   : > { %v1018_v22 = vmul.f32 %v1386_v44, %v1001_v1  ;;  %v1388_v62 = vpop.eup %1387 }
 0x229   : > { %v1173_v49 = vsel %vm1172_vm2, %v1169_v4, %v1171_v16  ;;  %v1025_v0 = vmul.f32 %v1388_v62, %v1002_v27  ;;  %v1842_v4 = vsel %vm857_vm7, 0.0, %v990_v59  ;;  %v1390_v18 = vpop.eup %1389  ;;  %vm1040_vm7 = vcmp.eq.f32.partialorder %v1004_v34, inf }
 0x22a   : > { %v1176_v56 = vsel %vm1174_vm3, %v1175_v48, %v1173_v49  ;;  %v1020_v25 = vsel %vm1019_vm4, %v1001_v1, %v1018_v22  ;;  %1393 = vrsqrt.f32 %v1842_v4  ;;  %v1039_v17 = vmul.f32 %v1390_v18, %v1004_v34  ;;  %v1392_v36 = vpop.eup %1391  ;;  %v905_v59 = vpop.xlane.xlu1 %904 }
 0x22b   : > { %1177 = vst [vmem:[%s2020_s2] sm:$0x1] %v1176_v56  ;;  %v1023_v12 = vsel %vm1021_vm0, %v1022_v57, %v1020_v25  ;;  %v1027_v1 = vsel %vm1026_vm5, %v1002_v27, %v1025_v0  ;;  %vm1028_vm0 = vcmp.eq.f32.partialorder %v1002_v27, 0.0  ;;  %v955_v27 = vmul.f32 2.0, %v1657_v13 }
 0x22c   : > { %1129 = vst [vmem:[%s2019_s1] sm:$0xff] %v1023_v12  ;;  %v1030_v21 = vsel %vm1028_vm0, %v1029_v10, %v1027_v1  ;;  %1395 = vrsqrt.f32 %v1853_v5  ;;  %v1041_v32 = vsel %vm1040_vm7, %v1004_v34, %v1039_v17  ;;  %vm1042_vm2 = vcmp.eq.f32.partialorder %v1004_v34, 0.0 }
 0x22d   : > { %1130 = vst [vmem:[%s2019_s1 + $0x8] sm:$0xff] %v1030_v21  ;;  %v1044_v40 = vsel %vm1042_vm2, %v1043_v11, %v1041_v32  ;;  %v1046_v13 = vmul.f32 %v1392_v36, %v1828_v7  ;;  %v1866_v16 = vsel %vm859_vm9, 0.0, %v992_v33  ;;  %v977_v34 = vsub.f32 %v945_v2, %v961_v24 }
 0x22e   : > { %1132 = vst [vmem:[%s2019_s1 + $0x18] sm:$0xff] %v1044_v40  ;;  %vm1049_vm3 = vcmp.eq.f32.partialorder %v1828_v7, 0.0  ;;  %1397 = vrsqrt.f32 %v1866_v16  ;;  %v964_v22 = vmul.f32 2.0, %v1748_v46  ;;  %v978_v25 = vsub.f32 %v946_v23, %v962_v38  ;;  %v909_v15 = vpop.xlane.xlu1 %908 }
 0x22f   : > { %v1048_v44 = vsel %vm1047_vm8, %v1828_v7, %v1046_v13  ;;  %v993_v45 = vmax.f32 %v977_v34, 0.0  ;;  %vm1054_vm9 = vcmp.eq.f32.partialorder %v1842_v4, inf  ;;  %vm1056_vm4 = vcmp.eq.f32.partialorder %v1842_v4, 0.0 }
 0x230   : > { %v1051_v52 = vsel %vm1049_vm3, %v1050_v37, %v1048_v44  ;;  %v1057_v46 = vand.u32 2147483648, %v1842_v4  ;;  %v994_v26 = vmax.f32 %v978_v25, 0.0  ;;  %v963_v0 = vmul.f32 2.0, %v1737_v42 }
 0x231   : > { %1133 = vst [vmem:[%s2019_s1 + $0x20] sm:$0xff] %v1051_v52  ;;  %v1883_v57 = vsel %vm860_vm10, 0.0, %v993_v45  ;;  %v965_v1 = vmul.f32 2.0, %v1759_v50  ;;  %vm1063_vm10 = vcmp.eq.f32.partialorder %v1853_v5, 0.0  ;;  %v947_v18 = vadd.f32 %v1801_v20, %v905_v59 }
 0x232   : > { %1399 = vrsqrt.f32 %v1883_v57  ;;  %v949_v17 = vadd.f32 %v1801_v20, %v909_v15  ;;  %vm1070_vm5 = vcmp.eq.f32.partialorder %v1866_v16, 0.0  ;;  %v1071_v11 = vand.u32 2147483648, %v1866_v16  ;;  %v913_v34 = vpop.xlane.xlu1 %912 }
 0x233   : > { %vm1077_vm0 = vcmp.eq.f32.partialorder %v1883_v57, 0.0  ;;  %v1078_v37 = vand.u32 2147483648, %v1883_v57  ;;  %v951_v35 = vadd.f32 %v1801_v20, %v913_v34  ;;  %vm2022_vm3 = vcmp.eq.s32.totalorder %v1764_v51, %v1628_v3 }
 0x234   : > { %v889_v19 = vpop.xlane.xlu0 %888  ;;  %v1394_v49 = vpop.eup %1393  ;;  %v981_v36 = vsub.f32 %v949_v17, %v965_v1 }
 0x235   : > { %v939_v41 = vadd.f32 %v1801_v20, %v889_v19  ;;  %v1053_v56 = vmul.f32 %v1394_v49, %v1842_v4  ;;  %v967_v19 = vmul.f32 2.0, %v1781_v58 }
 0x236   : > { %v1396_v63 = vpop.eup %1395  ;;  %v997_v58 = vmax.f32 %v981_v36, 0.0 }
 0x237   : > { %v971_v48 = vsub.f32 %v939_v41, %v955_v27  ;;  %v1055_v61 = vsel %vm1054_vm9, %v1842_v4, %v1053_v56  ;;  %v1060_v14 = vmul.f32 %v1396_v63, %v1853_v5  ;;  %v1907_v4 = vsel %vm861_vm11, 0.0, %v994_v26 }
 0x238   : > { %v907_v54 = vpop.xlane.xlu0 %906  ;;  %v1058_v9 = vsel %vm1056_vm4, %v1057_v46, %v1055_v61  ;;  %v1398_v31 = vpop.eup %1397  ;;  %vm1068_vm11 = vcmp.eq.f32.partialorder %v1866_v16, inf  ;;  %vm1082_vm7 = vcmp.eq.f32.partialorder %v1907_v4, inf  ;;  %v1085_v56 = vand.u32 2147483648, %v1907_v4 }
 0x239   : > { %v987_v7 = vmax.f32 %v971_v48, 0.0  ;;  %v948_v12 = vadd.f32 %v1801_v20, %v907_v54  ;;  %1134 = vst [vmem:[%s2019_s1 + $0x28] sm:$0xff] %v1058_v9  ;;  %v1067_v28 = vmul.f32 %v1398_v31, %v1866_v16 }
 0x23b   : > { %v1893_v62 = vsel %vm854_vm6, 0.0, %v987_v7  ;;  %v980_v42 = vsub.f32 %v948_v12, %v964_v22  ;;  %vm1061_vm6 = vcmp.eq.f32.partialorder %v1853_v5, inf  ;;  %v1069_v32 = vsel %vm1068_vm11, %v1866_v16, %v1067_v28 }
 0x23c   : > { %1401 = vrsqrt.f32 %v1893_v62  ;;  %v911_v10 = vpop.xlane.xlu0 %910  ;;  %v1062_v50 = vsel %vm1061_vm6, %v1853_v5, %v1060_v14  ;;  %v979_v5 = vsub.f32 %v947_v18, %v963_v0  ;;  %v1400_v40 = vpop.eup %1399  ;;  %v1072_v13 = vsel %vm1070_vm5, %v1071_v11, %v1069_v32 }
 0x23d   : > { %1403 = vrsqrt.f32 %v1907_v4  ;;  %v996_v29 = vmax.f32 %v980_v42, 0.0  ;;  %v950_v21 = vadd.f32 %v1801_v20, %v911_v10  ;;  %v1065_v24 = vsel %vm1063_vm10, %v1064_v53, %v1062_v50  ;;  %1136 = vst [vmem:[%s2019_s1 + $0x38] sm:$0xff] %v1072_v13 }
 0x23e   : > { %1135 = vst [vmem:[%s2019_s1 + $0x30] sm:$0xff] %v1065_v24  ;;  %v995_v33 = vmax.f32 %v979_v5, 0.0  ;;  %v1074_v41 = vmul.f32 %v1400_v40, %v1883_v57  ;;  %v1036_v49 = vand.u32 2147483648, %v1893_v62  ;;  %v1013_v22 = vsel %vm864_vm14, 0.0, %v997_v58 }
 0x23f   : > { %v1924_v30 = vsel %vm863_vm13, 0.0, %v996_v29  ;;  %v982_v27 = vsub.f32 %v950_v21, %v966_v8  ;;  %vm1075_vm13 = vcmp.eq.f32.partialorder %v1883_v57, inf  ;;  %vm1084_vm14 = vcmp.eq.f32.partialorder %v1907_v4, 0.0 }
 0x240   : > { %1405 = vrsqrt.f32 %v1924_v30  ;;  %v915_v38 = vpop.xlane.xlu0 %914  ;;  %v1011_v16 = vsel %vm862_vm12, 0.0, %v995_v33  ;;  %v1076_v45 = vsel %vm1075_vm13, %v1883_v57, %v1074_v41  ;;  %vm1033_vm12 = vcmp.eq.f32.partialorder %v1893_v62, inf }
 0x241   : > { %v998_v2 = vmax.f32 %v982_v27, 0.0  ;;  %1407 = vrsqrt.f32 %v1011_v16  ;;  %v952_v44 = vadd.f32 %v1801_v20, %v915_v38  ;;  %v1079_v23 = vsel %vm1077_vm0, %v1078_v37, %v1076_v45 }
 0x242   : > { %1137 = vst [vmem:[%s2019_s1 + $0x40] sm:$0xff] %v1079_v23  ;;  %v983_v7 = vsub.f32 %v951_v35, %v967_v19  ;;  %vm1096_vm2 = vcmp.eq.f32.partialorder %v1924_v30, inf  ;;  %v1099_v26 = vand.u32 2147483648, %v1924_v30  ;;  %vm1098_vm8 = vcmp.eq.f32.partialorder %v1924_v30, 0.0 }
 0x243   : > { %v1944_v60 = vsel %vm865_vm15, 0.0, %v998_v2  ;;  %vm1035_vm15 = vcmp.eq.f32.partialorder %v1893_v62, 0.0  ;;  %v984_v57 = vsub.f32 %v952_v44, %v968_v39  ;;  %vm1089_vm9 = vcmp.eq.f32.partialorder %v1011_v16, inf }
 0x244   : > { %1409 = vrsqrt.f32 %v1944_v60  ;;  %v1092_v55 = vand.u32 2147483648, %v1011_v16  ;;  %vm1110_vm4 = vcmp.eq.f32.partialorder %v1944_v60, inf  ;;  %v1113_v15 = vand.u32 2147483648, %v1944_v60 }
 0x245   : > { %1411 = vrsqrt.f32 %v1013_v22  ;;  %v1000_v46 = vmax.f32 %v984_v57, 0.0  ;;  %vm1112_vm6 = vcmp.eq.f32.partialorder %v1944_v60, 0.0  ;;  %vm1103_vm10 = vcmp.eq.f32.partialorder %v1013_v22, inf }
 0x246   : > { %v1402_v6 = vpop.eup %1401  ;;  %v1106_v29 = vand.u32 2147483648, %v1013_v22  ;;  %vm1105_vm11 = vcmp.eq.f32.partialorder %v1013_v22, 0.0 }
 0x247   : > { %v1032_v48 = vmul.f32 %v1402_v6, %v1893_v62  ;;  %v1404_v47 = vpop.eup %1403  ;;  %v1016_v12 = vsel %vm867_vm1, 0.0, %v1000_v46  ;;  %vm1091_vm1 = vcmp.eq.f32.partialorder %v1011_v16, 0.0 }
 0x248   : > { %v1081_v20 = vmul.f32 %v1404_v47, %v1907_v4  ;;  %1413 = vrsqrt.f32 %v1016_v12  ;;  %vm1124_vm5 = vcmp.eq.f32.partialorder %v1016_v12, inf  ;;  %v1127_v28 = vand.u32 2147483648, %v1016_v12 }
 0x249   : > { %v1034_v52 = vsel %vm1033_vm12, %v1893_v62, %v1032_v48  ;;  %v999_v62 = vmax.f32 %v983_v7, 0.0  ;;  %vm1126_vm13 = vcmp.eq.f32.partialorder %v1016_v12, 0.0 }
 0x24a   : > { %v1037_v54 = vsel %vm1035_vm15, %v1036_v49, %v1034_v52  ;;  %v1083_v43 = vsel %vm1082_vm7, %v1907_v4, %v1081_v20  ;;  %v1406_v25 = vpop.eup %1405 }
 0x24b   : > { %1131 = vst [vmem:[%s2019_s1 + $0x10] sm:$0xff] %v1037_v54  ;;  %v1086_v59 = vsel %vm1084_vm14, %v1085_v56, %v1083_v43  ;;  %v1095_v61 = vmul.f32 %v1406_v25, %v1924_v30  ;;  %v1408_v0 = vpop.eup %1407  ;;  %v1015_v9 = vsel %vm2022_vm3, 0.0, %v999_v62 }
 0x24c   : > { %1138 = vst [vmem:[%s2019_s1 + $0x48] sm:$0xff] %v1086_v59  ;;  %v1088_v1 = vmul.f32 %v1408_v0, %v1011_v16  ;;  %1415 = vrsqrt.f32 %v1015_v9  ;;  %vm1117_vm0 = vcmp.eq.f32.partialorder %v1015_v9, inf  ;;  %v1120_v11 = vand.u32 2147483648, %v1015_v9 }
 0x24d   : > { %v1097_v63 = vsel %vm1096_vm2, %v1924_v30, %v1095_v61  ;;  %vm1119_vm12 = vcmp.eq.f32.partialorder %v1015_v9, 0.0 }
 0x24e   : > { %v1100_v8 = vsel %vm1098_vm8, %v1099_v26, %v1097_v63  ;;  %v1410_v10 = vpop.eup %1409  ;;  %v1090_v42 = vsel %vm1089_vm9, %v1011_v16, %v1088_v1 }
 0x24f   : > { %1140 = vst [vmem:[%s2019_s1 + $0x58] sm:$0xff] %v1100_v8  ;;  %v1109_v14 = vmul.f32 %v1410_v10, %v1944_v60  ;;  %v1412_v4 = vpop.eup %1411  ;;  %v1093_v3 = vsel %vm1091_vm1, %v1092_v55, %v1090_v42 }
 0x250   : > { %v1102_v53 = vmul.f32 %v1412_v4, %v1013_v22  ;;  %1139 = vst [vmem:[%s2019_s1 + $0x50] sm:$0xff] %v1093_v3 }
 0x251   : > { %v1111_v51 = vsel %vm1110_vm4, %v1944_v60, %v1109_v14 }
 0x252   : > { %v1114_v50 = vsel %vm1112_vm6, %v1113_v15, %v1111_v51  ;;  %v1104_v18 = vsel %vm1103_vm10, %v1013_v22, %v1102_v53  ;;  %v1414_v31 = vpop.eup %1413 }
 0x253   : > { %1142 = vst [vmem:[%s2019_s1 + $0x68] sm:$0xff] %v1114_v50  ;;  %v1107_v21 = vsel %vm1105_vm11, %v1106_v29, %v1104_v18  ;;  %v1123_v24 = vmul.f32 %v1414_v31, %v1016_v12 }
 0x254   : > { %1141 = vst [vmem:[%s2019_s1 + $0x60] sm:$0xff] %v1107_v21 }
 0x255   : > { %v1125_v30 = vsel %vm1124_vm5, %v1016_v12, %v1123_v24 }
 0x256   : > { %v1416_v17 = vpop.eup %1415  ;;  %v1128_v27 = vsel %vm1126_vm13, %v1127_v28, %v1125_v30 }
 0x257   : > { %v1116_v5 = vmul.f32 %v1416_v17, %v1015_v9  ;;  %1144 = vst [vmem:[%s2019_s1 + $0x78] sm:$0xff] %v1128_v27 }
 0x259   : > { %v1118_v32 = vsel %vm1117_vm0, %v1015_v9, %v1116_v5 }
 0x25a   : > { %v1121_v33 = vsel %vm1119_vm12, %v1120_v11, %v1118_v32 }
 0x25b   : > { %1143 = vst [vmem:[%s2019_s1 + $0x70] sm:$0xff] %v1121_v33 }
 0x25c PF: > { %p10_p10 = scmp.ge.s32.totalorder %s1476_s13, 6   ;;  %s2023_s9 = smov %s1435_s10 }
 0x25d   : > { %s2024_s10 = smov %s1485_s16  ;;  %s2025_s11 = smov %s1476_s13 }
 0x25e   :  { %12 = sbr.rel (!%p10_p10) target bundleno = 2 (0x2), region = 109 }

</bundles_post_ra>
